<compile_context>
chip_gen: v6e
topology: v6e:2x2x1
jax: 0.10.0
libtpu: 0.0.40
codegen_flags: <defaults>
</compile_context>

<pallas_src>
import numpy as np
import jax
import jax.numpy as jnp
from jax.experimental import pallas as pl
from jax.experimental.pallas import tpu as pltpu

# ----- hyperparameters implied by the module's (global) constants -----------
NEURONS = 4                 # `neurons`
FC_SIZE = 32                # `fc_size`
SPATIAL = 16                # input H = W
DOWN_X = SPATIAL // 4       # two stride-2 convs: 16 -> 8 -> 4  (`down_x`)
NUM_ADD = 3                 # num_additional_features
ACTION_DIM = 2              # action_dim
BATCH = 2

C1 = NEURONS                # conv1 out channels per head (4)
C2 = NEURONS * 2            # conv2 out channels per head (8)
H1 = SPATIAL // 2           # conv1 output spatial (8)
H2 = SPATIAL // 4           # conv2 output spatial (4)
S1 = H1 * H1                # 64
S2 = H2 * H2                # 16
CC1 = 2 * C1                # both heads stacked (8)
CC2 = 2 * C2                # both heads stacked (16)
K_PAD = 16                  # im2col K padded 9 -> 16
FLAT = S2 * CC2             # 256 (both heads' flatten, NHWC-combined order)
FLAT_TORCH = C2 * DOWN_X * DOWN_X   # 128 per-head torch (NCHW) flatten size
NFC1 = 2 * FC_SIZE          # 64
NFC2 = 2 * (FC_SIZE // 2)   # 32
N_OUT = 128                 # lane-dense final output width
EXTRA_DIM = NUM_ADD + ACTION_DIM    # 5
EXTRA_PAD = 8


# ----------------------------- fused Pallas kernel ---------------------------
def _critic_fused_kernel(p1_ref, w1c_ref, b1c_ref, g_ref, w2c_ref, b2c_ref,
                         rep_ref, mask_ref, sumb_ref, extra_ref,
                         w1f_ref, w1e_ref, b1f_ref, w2f_ref, b2f_ref,
                         w3f_ref, b3f_ref, out_ref):
    dot = lambda a, b: jnp.dot(a, b, preferred_element_type=jnp.float32)

    # conv1 (+ReLU), both heads stacked along N: [B*64, 16] @ [16, 8]
    a1 = jnp.maximum(dot(p1_ref[...], w1c_ref[...]) + b1c_ref[...], 0.0)

    # conv2 (+ReLU): im2col as 9 constant gather matmuls, block-diag weights.
    # g[tap] selects (with zero padding) the conv1 rows feeding each output
    # position; w2c[tap] is the per-tap weight, block-diagonal over the heads.
    acc = None
    for tap in range(9):
        contrib = dot(dot(g_ref[tap], a1), w2c_ref[tap])      # [B*16, 16]
        acc = contrib if acc is None else acc + contrib
    a2 = jnp.maximum(acc + b2c_ref[...], 0.0)                 # rows = (b, s2)

    # Flatten: (b, s2)-rows -> batch-rows [M_PAD, 256] via replicate/mask/sum.
    # (The NCHW ordering itself is folded into w1f wrapper-side.)
    flat = dot(sumb_ref[...], dot(a2, rep_ref[...]) * mask_ref[...])

    # fc1 / fc2 / fc3, heads stacked along N (block-diagonal weights);
    # fc3 weight is zero-padded to 128 lanes so the single store is lane-dense.
    h1 = jnp.maximum(dot(flat, w1f_ref[...])
                     + dot(extra_ref[...], w1e_ref[...]) + b1f_ref[...], 0.0)
    h2 = jnp.maximum(dot(h1, w2f_ref[...]) + b2f_ref[...], 0.0)
    out_ref[...] = dot(h2, w3f_ref[...]) + b3f_ref[...]


# --------------------------- wrapper-side plumbing ----------------------------
def _build_static_constants(batch):
    """Constant 0/1 matrices: conv2 gather, flatten replicate/mask/sum."""
    m_pad = max(8, ((batch + 7) // 8) * 8)
    # conv2 gather: g[tap, (b, oh, ow), (b, ih, iw)] = 1 (zero rows = padding)
    g = np.zeros((9, batch * S2, batch * S1), np.float32)
    for kh in range(3):
        for kw in range(3):
            tap = kh * 3 + kw
            for b in range(batch):
                for oh in range(H2):
                    for ow in range(H2):
                        ih, iw = 2 * oh - 1 + kh, 2 * ow - 1 + kw
                        if 0 <= ih < H1 and 0 <= iw < H1:
                            g[tap, b * S2 + oh * H2 + ow,
                              b * S1 + ih * H1 + iw] = 1.0
    # lane replication: rep[c, s*CC2 + c] = 1
    rep = np.zeros((CC2, FLAT), np.float32)
    for s in range(S2):
        for c in range(CC2):
            rep[c, s * CC2 + c] = 1.0
    # mask[(b, s), s'*CC2 + c] = (s == s')
    mask = np.zeros((batch * S2, FLAT), np.float32)
    for b in range(batch):
        for s in range(S2):
            mask[b * S2 + s, s * CC2:(s + 1) * CC2] = 1.0
    # batch row-sum: sumb[b, b*S2 + s] = 1 (padded to m_pad rows)
    sumb = np.zeros((m_pad, batch * S2), np.float32)
    for b in range(batch):
        sumb[b, b * S2:(b + 1) * S2] = 1.0
    return (jnp.asarray(g), jnp.asarray(rep), jnp.asarray(mask),
            jnp.asarray(sumb))


def pack_critic_params(params, batch=BATCH):
    """One-time layout plumbing: stack heads along N, fold NCHW flatten into
    fc1's rows, build block-diagonal fc2/fc3, pad everything to (8,*)-friendly
    shapes and lane-dense output width."""
    f32 = jnp.float32
    g, rep, mask, sumb = _build_static_constants(batch)

    # conv1: both heads stacked along N, K padded 9 -> 16
    w1c = jnp.zeros((K_PAD, CC1), f32)
    w1c = w1c.at[:9, :C1].set(params["conv1a_w"].reshape(C1, 9).T)
    w1c = w1c.at[:9, C1:].set(params["conv2a_w"].reshape(C1, 9).T)
    b1c = jnp.concatenate([params["conv1a_b"], params["conv2a_b"]]).reshape(1, CC1)

    # conv2: per-tap weights, block-diagonal over heads  [9, CC1, CC2]
    w2c = jnp.zeros((9, CC1, CC2), f32)
    for kh in range(3):
        for kw in range(3):
            tap = kh * 3 + kw
            w2c = w2c.at[tap, :C1, :C2].set(params["conv1b_w"][:, :, kh, kw].T)
            w2c = w2c.at[tap, C1:, C2:].set(params["conv2b_w"][:, :, kh, kw].T)
    b2c = jnp.concatenate([params["conv1b_b"], params["conv2b_b"]]).reshape(1, CC2)

    # fc1: fold the NCHW flatten permutation into the weight rows
    def fc1_spatial(w):            # [FC_SIZE, 133] -> [S2, C2, FC_SIZE]
        return w[:, :FLAT_TORCH].reshape(FC_SIZE, C2, S2).transpose(2, 1, 0)
    w1f = jnp.zeros((S2, CC2, NFC1), f32)
    w1f = w1f.at[:, :C2, :FC_SIZE].set(fc1_spatial(params["fc11_w"]))
    w1f = w1f.at[:, C2:, FC_SIZE:].set(fc1_spatial(params["fc21_w"]))
    w1f = w1f.reshape(FLAT, NFC1)
    w1e = jnp.zeros((EXTRA_PAD, NFC1), f32)
    w1e = w1e.at[:EXTRA_DIM, :FC_SIZE].set(params["fc11_w"][:, FLAT_TORCH:].T)
    w1e = w1e.at[:EXTRA_DIM, FC_SIZE:].set(params["fc21_w"][:, FLAT_TORCH:].T)
    b1f = jnp.concatenate([params["fc11_b"], params["fc21_b"]]).reshape(1, NFC1)

    # fc2 / fc3: block-diagonal over heads; fc3 padded to 128 output lanes
    w2f = jnp.zeros((NFC1, NFC2), f32)
    w2f = w2f.at[:FC_SIZE, :FC_SIZE // 2].set(params["fc12_w"].T)
    w2f = w2f.at[FC_SIZE:, FC_SIZE // 2:].set(params["fc22_w"].T)
    b2f = jnp.concatenate([params["fc12_b"], params["fc22_b"]]).reshape(1, NFC2)

    w3f = jnp.zeros((NFC2, N_OUT), f32)
    w3f = w3f.at[:FC_SIZE // 2, 0].set(params["fc13_w"][0])
    w3f = w3f.at[FC_SIZE // 2:, 1].set(params["fc23_w"][0])
    b3f = jnp.zeros((1, N_OUT), f32)
    b3f = b3f.at[0, 0].set(params["fc13_b"][0])
    b3f = b3f.at[0, 1].set(params["fc23_b"][0])

    return dict(w1c=w1c, b1c=b1c, g=g, w2c=w2c, b2c=b2c, rep=rep, mask=mask,
                sumb=sumb, w1f=w1f, w1e=w1e, b1f=b1f, w2f=w2f, b2f=b2f,
                w3f=w3f, b3f=b3f)


def _im2col_conv1(x):
    """[B, 1, 16, 16] -> [B*64, 16] stride-2/pad-1/k=3 patches (K zero-padded).
    Done once, shared by both heads."""
    b = x.shape[0]
    xp = jnp.pad(x, ((0, 0), (0, 0), (1, 1), (1, 1)))
    cols = [xp[:, 0, kh:kh + 2 * H1:2, kw:kw + 2 * H1:2]
            for kh in range(3) for kw in range(3)]          # each [B, 8, 8]
    p = jnp.stack(cols, axis=-1).reshape(b * S1, 9)         # rows (b, oh, ow)
    return jnp.pad(p, ((0, 0), (0, K_PAD - 9)))


def critic_forward(packed, spatial_input, additional_features, action):
    b = spatial_input.shape[0]
    m_pad = packed["sumb"].shape[0]
    assert packed["g"].shape[2] == b * S1, "packed params built for another batch"

    p1 = _im2col_conv1(spatial_input.astype(jnp.float32))
    extra = jnp.zeros((m_pad, EXTRA_PAD), jnp.float32)
    extra = extra.at[:b, :EXTRA_DIM].set(
        jnp.concatenate([additional_features, action], axis=1).astype(jnp.float32))

    vmem = pl.BlockSpec(memory_space=pltpu.MemorySpace.VMEM)
    out = pl.pallas_call(
        _critic_fused_kernel,
        out_shape=jax.ShapeDtypeStruct((m_pad, N_OUT), jnp.float32),
        in_specs=[vmem] * 17,
        out_specs=vmem,
        cost_estimate=pl.CostEstimate(flops=1_500_000, transcendentals=0,
                                      bytes_accessed=400_000),
    )(p1, packed["w1c"], packed["b1c"], packed["g"], packed["w2c"],
      packed["b2c"], packed["rep"], packed["mask"], packed["sumb"], extra,
      packed["w1f"], packed["w1e"], packed["b1f"], packed["w2f"],
      packed["b2f"], packed["w3f"], packed["b3f"])

    return out[:b, 0:1], out[:b, 1:2]


# ------------------------------ parameter init -------------------------------
def _uniform(key, shape, fan_in):
    bound = 1.0 / jnp.sqrt(float(fan_in))
    return jax.random.uniform(key, shape, jnp.float32, -bound, bound)


def init_critic_params(key):
    flat_dim = NEURONS * 2 * DOWN_X * DOWN_X + NUM_ADD + ACTION_DIM
    params = {}
    keys = jax.random.split(key, 24)
    i = 0
    for head in ("1", "2"):
        params[f"conv{head}a_w"] = _uniform(keys[i], (NEURONS, 1, 3, 3), 9); i += 1
        params[f"conv{head}a_b"] = _uniform(keys[i], (NEURONS,), 9); i += 1
        params[f"conv{head}b_w"] = _uniform(keys[i], (NEURONS * 2, NEURONS, 3, 3), NEURONS * 9); i += 1
        params[f"conv{head}b_b"] = _uniform(keys[i], (NEURONS * 2,), NEURONS * 9); i += 1
        params[f"fc{head}1_w"] = _uniform(keys[i], (FC_SIZE, flat_dim), flat_dim); i += 1
        params[f"fc{head}1_b"] = _uniform(keys[i], (FC_SIZE,), flat_dim); i += 1
        params[f"fc{head}2_w"] = _uniform(keys[i], (FC_SIZE // 2, FC_SIZE), FC_SIZE); i += 1
        params[f"fc{head}2_b"] = _uniform(keys[i], (FC_SIZE // 2,), FC_SIZE); i += 1
        params[f"fc{head}3_w"] = _uniform(keys[i], (1, FC_SIZE // 2), FC_SIZE // 2); i += 1
        params[f"fc{head}3_b"] = _uniform(keys[i], (1,), FC_SIZE // 2); i += 1
    return params


# --------------------------- pure-JAX reference ------------------------------
def _ref_conv_relu(x, w, b):
    y = jax.lax.conv_general_dilated(
        x, w, window_strides=(2, 2), padding=[(1, 1), (1, 1)],
        dimension_numbers=("NCHW", "OIHW", "NCHW"))
    return jax.nn.relu(y + b[None, :, None, None])


def critic_ref(params, spatial_input, additional_features, action):
    B = spatial_input.shape[0]

    def head(h):
        x = _ref_conv_relu(spatial_input, params[f"conv{h}a_w"], params[f"conv{h}a_b"])
        x = _ref_conv_relu(x, params[f"conv{h}b_w"], params[f"conv{h}b_b"])
        flat = x.reshape(B, -1)
        c = jnp.concatenate([flat, additional_features, action], axis=1)
        x = jax.nn.relu(c @ params[f"fc{h}1_w"].T + params[f"fc{h}1_b"])
        x = jax.nn.relu(x @ params[f"fc{h}2_w"].T + params[f"fc{h}2_b"])
        return x @ params[f"fc{h}3_w"].T + params[f"fc{h}3_b"]

    return head("1"), head("2")


# ------------------------------------ main -----------------------------------
if __name__ == "__main__":
    key = jax.random.PRNGKey(0)
    kp, ks, ka, kc = jax.random.split(key, 4)

    params = init_critic_params(kp)
    spatial_input = jax.random.normal(ks, (BATCH, 1, SPATIAL, SPATIAL), jnp.float32)
    additional_features = jax.random.normal(ka, (BATCH, NUM_ADD), jnp.float32)
    action = jax.random.normal(kc, (BATCH, ACTION_DIM), jnp.float32)

    packed = pack_critic_params(params, BATCH)          # one-time layout plumbing
    fwd = jax.jit(critic_forward)                       # single fused kernel call

    q1, q2 = fwd(packed, spatial_input, additional_features, action)
    q1 = jax.block_until_ready(q1)
    q2 = jax.block_until_ready(q2)

    r1, r2 = critic_ref(params, spatial_input, additional_features, action)
    assert q1.shape == (BATCH, 1) and q2.shape == (BATCH, 1)
    assert jnp.allclose(q1, r1, rtol=1e-4, atol=1e-4)
    assert jnp.allclose(q2, r2, rtol=1e-4, atol=1e-4)

    print("KERNEL_OK")
</pallas_src>

<mosaic_0001>
module attributes {stable_mosaic.version = 11 : i64} {
  func.func @_critic_fused_kernel(%arg0: memref<128x16xf32, #tpu.memory_space<vmem>>, %arg1: memref<16x8xf32, #tpu.memory_space<vmem>>, %arg2: memref<1x8xf32, #tpu.memory_space<vmem>>, %arg3: memref<9x32x128xf32, #tpu.memory_space<vmem>>, %arg4: memref<9x8x16xf32, #tpu.memory_space<vmem>>, %arg5: memref<1x16xf32, #tpu.memory_space<vmem>>, %arg6: memref<16x256xf32, #tpu.memory_space<vmem>>, %arg7: memref<32x256xf32, #tpu.memory_space<vmem>>, %arg8: memref<8x32xf32, #tpu.memory_space<vmem>>, %arg9: memref<8x8xf32, #tpu.memory_space<vmem>>, %arg10: memref<256x64xf32, #tpu.memory_space<vmem>>, %arg11: memref<8x64xf32, #tpu.memory_space<vmem>>, %arg12: memref<1x64xf32, #tpu.memory_space<vmem>>, %arg13: memref<64x32xf32, #tpu.memory_space<vmem>>, %arg14: memref<1x32xf32, #tpu.memory_space<vmem>>, %arg15: memref<32x128xf32, #tpu.memory_space<vmem>>, %arg16: memref<1x128xf32, #tpu.memory_space<vmem>>, %arg17: memref<8x128xf32, #tpu.memory_space<vmem>>) attributes {dimension_semantics = [], scalar_prefetch = 0 : i64, scratch_operands = 0 : i64, tpu.core_type = #tpu.core_type<tc>} {
    %c0 = arith.constant 0 : index
    %c0_0 = arith.constant 0 : index
    %0 = vector.load %arg0[%c0, %c0_0] : memref<128x16xf32, #tpu.memory_space<vmem>>, vector<128x16xf32>
    %c0_1 = arith.constant 0 : index
    %c0_2 = arith.constant 0 : index
    %1 = vector.load %arg1[%c0_1, %c0_2] : memref<16x8xf32, #tpu.memory_space<vmem>>, vector<16x8xf32>
    %cst = arith.constant dense<0.000000e+00> : vector<128x8xf32>
    %2 = tpu.matmul %0, %1, %cst {dimension_numbers = #tpu.dot_dimension_numbers<[1], [0], [0], [1], [0, 0, 1, 1], [], []>} : vector<128x16xf32>, vector<16x8xf32>, vector<128x8xf32> -> vector<128x8xf32>
    %c0_3 = arith.constant 0 : index
    %c0_4 = arith.constant 0 : index
    %3 = vector.load %arg2[%c0_3, %c0_4] : memref<1x8xf32, #tpu.memory_space<vmem>>, vector<1x8xf32>
    %4 = vector.broadcast %3 : vector<1x8xf32> to vector<128x8xf32>
    %5 = arith.addf %2, %4 : vector<128x8xf32>
    %cst_5 = arith.constant 0.000000e+00 : f32
    %6 = vector.broadcast %cst_5 : f32 to vector<128x8xf32>
    %7 = arith.maximumf %5, %6 : vector<128x8xf32>
    %c0_6 = arith.constant 0 : index
    %c0_7 = arith.constant 0 : index
    %c0_8 = arith.constant 0 : index
    %8 = vector.load %arg3[%c0_6, %c0_7, %c0_8] : memref<9x32x128xf32, #tpu.memory_space<vmem>>, vector<1x32x128xf32>
    %9 = vector.shape_cast %8 : vector<1x32x128xf32> to vector<32x128xf32>
    %cst_9 = arith.constant dense<0.000000e+00> : vector<32x8xf32>
    %10 = tpu.matmul %9, %7, %cst_9 {dimension_numbers = #tpu.dot_dimension_numbers<[1], [0], [0], [1], [0, 0, 1, 1], [], []>} : vector<32x128xf32>, vector<128x8xf32>, vector<32x8xf32> -> vector<32x8xf32>
    %c0_10 = arith.constant 0 : index
    %c0_11 = arith.constant 0 : index
    %c0_12 = arith.constant 0 : index
    %11 = vector.load %arg4[%c0_10, %c0_11, %c0_12] : memref<9x8x16xf32, #tpu.memory_space<vmem>>, vector<1x8x16xf32>
    %12 = vector.shape_cast %11 : vector<1x8x16xf32> to vector<8x16xf32>
    %cst_13 = arith.constant dense<0.000000e+00> : vector<32x16xf32>
    %13 = tpu.matmul %10, %12, %cst_13 {dimension_numbers = #tpu.dot_dimension_numbers<[1], [0], [0], [1], [0, 0, 1, 1], [], []>} : vector<32x8xf32>, vector<8x16xf32>, vector<32x16xf32> -> vector<32x16xf32>
    %c1 = arith.constant 1 : index
    %c0_14 = arith.constant 0 : index
    %c0_15 = arith.constant 0 : index
    %14 = vector.load %arg3[%c1, %c0_14, %c0_15] : memref<9x32x128xf32, #tpu.memory_space<vmem>>, vector<1x32x128xf32>
    %15 = vector.shape_cast %14 : vector<1x32x128xf32> to vector<32x128xf32>
    %cst_16 = arith.constant dense<0.000000e+00> : vector<32x8xf32>
    %16 = tpu.matmul %15, %7, %cst_16 {dimension_numbers = #tpu.dot_dimension_numbers<[1], [0], [0], [1], [0, 0, 1, 1], [], []>} : vector<32x128xf32>, vector<128x8xf32>, vector<32x8xf32> -> vector<32x8xf32>
    %c1_17 = arith.constant 1 : index
    %c0_18 = arith.constant 0 : index
    %c0_19 = arith.constant 0 : index
    %17 = vector.load %arg4[%c1_17, %c0_18, %c0_19] : memref<9x8x16xf32, #tpu.memory_space<vmem>>, vector<1x8x16xf32>
    %18 = vector.shape_cast %17 : vector<1x8x16xf32> to vector<8x16xf32>
    %cst_20 = arith.constant dense<0.000000e+00> : vector<32x16xf32>
    %19 = tpu.matmul %16, %18, %cst_20 {dimension_numbers = #tpu.dot_dimension_numbers<[1], [0], [0], [1], [0, 0, 1, 1], [], []>} : vector<32x8xf32>, vector<8x16xf32>, vector<32x16xf32> -> vector<32x16xf32>
    %20 = arith.addf %13, %19 : vector<32x16xf32>
    %c2 = arith.constant 2 : index
    %c0_21 = arith.constant 0 : index
    %c0_22 = arith.constant 0 : index
    %21 = vector.load %arg3[%c2, %c0_21, %c0_22] : memref<9x32x128xf32, #tpu.memory_space<vmem>>, vector<1x32x128xf32>
    %22 = vector.shape_cast %21 : vector<1x32x128xf32> to vector<32x128xf32>
    %cst_23 = arith.constant dense<0.000000e+00> : vector<32x8xf32>
    %23 = tpu.matmul %22, %7, %cst_23 {dimension_numbers = #tpu.dot_dimension_numbers<[1], [0], [0], [1], [0, 0, 1, 1], [], []>} : vector<32x128xf32>, vector<128x8xf32>, vector<32x8xf32> -> vector<32x8xf32>
    %c2_24 = arith.constant 2 : index
    %c0_25 = arith.constant 0 : index
    %c0_26 = arith.constant 0 : index
    %24 = vector.load %arg4[%c2_24, %c0_25, %c0_26] : memref<9x8x16xf32, #tpu.memory_space<vmem>>, vector<1x8x16xf32>
    %25 = vector.shape_cast %24 : vector<1x8x16xf32> to vector<8x16xf32>
    %cst_27 = arith.constant dense<0.000000e+00> : vector<32x16xf32>
    %26 = tpu.matmul %23, %25, %cst_27 {dimension_numbers = #tpu.dot_dimension_numbers<[1], [0], [0], [1], [0, 0, 1, 1], [], []>} : vector<32x8xf32>, vector<8x16xf32>, vector<32x16xf32> -> vector<32x16xf32>
    %27 = arith.addf %20, %26 : vector<32x16xf32>
    %c3 = arith.constant 3 : index
    %c0_28 = arith.constant 0 : index
    %c0_29 = arith.constant 0 : index
    %28 = vector.load %arg3[%c3, %c0_28, %c0_29] : memref<9x32x128xf32, #tpu.memory_space<vmem>>, vector<1x32x128xf32>
    %29 = vector.shape_cast %28 : vector<1x32x128xf32> to vector<32x128xf32>
    %cst_30 = arith.constant dense<0.000000e+00> : vector<32x8xf32>
    %30 = tpu.matmul %29, %7, %cst_30 {dimension_numbers = #tpu.dot_dimension_numbers<[1], [0], [0], [1], [0, 0, 1, 1], [], []>} : vector<32x128xf32>, vector<128x8xf32>, vector<32x8xf32> -> vector<32x8xf32>
    %c3_31 = arith.constant 3 : index
    %c0_32 = arith.constant 0 : index
    %c0_33 = arith.constant 0 : index
    %31 = vector.load %arg4[%c3_31, %c0_32, %c0_33] : memref<9x8x16xf32, #tpu.memory_space<vmem>>, vector<1x8x16xf32>
    %32 = vector.shape_cast %31 : vector<1x8x16xf32> to vector<8x16xf32>
    %cst_34 = arith.constant dense<0.000000e+00> : vector<32x16xf32>
    %33 = tpu.matmul %30, %32, %cst_34 {dimension_numbers = #tpu.dot_dimension_numbers<[1], [0], [0], [1], [0, 0, 1, 1], [], []>} : vector<32x8xf32>, vector<8x16xf32>, vector<32x16xf32> -> vector<32x16xf32>
    %34 = arith.addf %27, %33 : vector<32x16xf32>
    %c4 = arith.constant 4 : index
    %c0_35 = arith.constant 0 : index
    %c0_36 = arith.constant 0 : index
    %35 = vector.load %arg3[%c4, %c0_35, %c0_36] : memref<9x32x128xf32, #tpu.memory_space<vmem>>, vector<1x32x128xf32>
    %36 = vector.shape_cast %35 : vector<1x32x128xf32> to vector<32x128xf32>
    %cst_37 = arith.constant dense<0.000000e+00> : vector<32x8xf32>
    %37 = tpu.matmul %36, %7, %cst_37 {dimension_numbers = #tpu.dot_dimension_numbers<[1], [0], [0], [1], [0, 0, 1, 1], [], []>} : vector<32x128xf32>, vector<128x8xf32>, vector<32x8xf32> -> vector<32x8xf32>
    %c4_38 = arith.constant 4 : index
    %c0_39 = arith.constant 0 : index
    %c0_40 = arith.constant 0 : index
    %38 = vector.load %arg4[%c4_38, %c0_39, %c0_40] : memref<9x8x16xf32, #tpu.memory_space<vmem>>, vector<1x8x16xf32>
    %39 = vector.shape_cast %38 : vector<1x8x16xf32> to vector<8x16xf32>
    %cst_41 = arith.constant dense<0.000000e+00> : vector<32x16xf32>
    %40 = tpu.matmul %37, %39, %cst_41 {dimension_numbers = #tpu.dot_dimension_numbers<[1], [0], [0], [1], [0, 0, 1, 1], [], []>} : vector<32x8xf32>, vector<8x16xf32>, vector<32x16xf32> -> vector<32x16xf32>
    %41 = arith.addf %34, %40 : vector<32x16xf32>
    %c5 = arith.constant 5 : index
    %c0_42 = arith.constant 0 : index
    %c0_43 = arith.constant 0 : index
    %42 = vector.load %arg3[%c5, %c0_42, %c0_43] : memref<9x32x128xf32, #tpu.memory_space<vmem>>, vector<1x32x128xf32>
    %43 = vector.shape_cast %42 : vector<1x32x128xf32> to vector<32x128xf32>
    %cst_44 = arith.constant dense<0.000000e+00> : vector<32x8xf32>
    %44 = tpu.matmul %43, %7, %cst_44 {dimension_numbers = #tpu.dot_dimension_numbers<[1], [0], [0], [1], [0, 0, 1, 1], [], []>} : vector<32x128xf32>, vector<128x8xf32>, vector<32x8xf32> -> vector<32x8xf32>
    %c5_45 = arith.constant 5 : index
    %c0_46 = arith.constant 0 : index
    %c0_47 = arith.constant 0 : index
    %45 = vector.load %arg4[%c5_45, %c0_46, %c0_47] : memref<9x8x16xf32, #tpu.memory_space<vmem>>, vector<1x8x16xf32>
    %46 = vector.shape_cast %45 : vector<1x8x16xf32> to vector<8x16xf32>
    %cst_48 = arith.constant dense<0.000000e+00> : vector<32x16xf32>
    %47 = tpu.matmul %44, %46, %cst_48 {dimension_numbers = #tpu.dot_dimension_numbers<[1], [0], [0], [1], [0, 0, 1, 1], [], []>} : vector<32x8xf32>, vector<8x16xf32>, vector<32x16xf32> -> vector<32x16xf32>
    %48 = arith.addf %41, %47 : vector<32x16xf32>
    %c6 = arith.constant 6 : index
    %c0_49 = arith.constant 0 : index
    %c0_50 = arith.constant 0 : index
    %49 = vector.load %arg3[%c6, %c0_49, %c0_50] : memref<9x32x128xf32, #tpu.memory_space<vmem>>, vector<1x32x128xf32>
    %50 = vector.shape_cast %49 : vector<1x32x128xf32> to vector<32x128xf32>
    %cst_51 = arith.constant dense<0.000000e+00> : vector<32x8xf32>
    %51 = tpu.matmul %50, %7, %cst_51 {dimension_numbers = #tpu.dot_dimension_numbers<[1], [0], [0], [1], [0, 0, 1, 1], [], []>} : vector<32x128xf32>, vector<128x8xf32>, vector<32x8xf32> -> vector<32x8xf32>
    %c6_52 = arith.constant 6 : index
    %c0_53 = arith.constant 0 : index
    %c0_54 = arith.constant 0 : index
    %52 = vector.load %arg4[%c6_52, %c0_53, %c0_54] : memref<9x8x16xf32, #tpu.memory_space<vmem>>, vector<1x8x16xf32>
    %53 = vector.shape_cast %52 : vector<1x8x16xf32> to vector<8x16xf32>
    %cst_55 = arith.constant dense<0.000000e+00> : vector<32x16xf32>
    %54 = tpu.matmul %51, %53, %cst_55 {dimension_numbers = #tpu.dot_dimension_numbers<[1], [0], [0], [1], [0, 0, 1, 1], [], []>} : vector<32x8xf32>, vector<8x16xf32>, vector<32x16xf32> -> vector<32x16xf32>
    %55 = arith.addf %48, %54 : vector<32x16xf32>
    %c7 = arith.constant 7 : index
    %c0_56 = arith.constant 0 : index
    %c0_57 = arith.constant 0 : index
    %56 = vector.load %arg3[%c7, %c0_56, %c0_57] : memref<9x32x128xf32, #tpu.memory_space<vmem>>, vector<1x32x128xf32>
    %57 = vector.shape_cast %56 : vector<1x32x128xf32> to vector<32x128xf32>
    %cst_58 = arith.constant dense<0.000000e+00> : vector<32x8xf32>
    %58 = tpu.matmul %57, %7, %cst_58 {dimension_numbers = #tpu.dot_dimension_numbers<[1], [0], [0], [1], [0, 0, 1, 1], [], []>} : vector<32x128xf32>, vector<128x8xf32>, vector<32x8xf32> -> vector<32x8xf32>
    %c7_59 = arith.constant 7 : index
    %c0_60 = arith.constant 0 : index
    %c0_61 = arith.constant 0 : index
    %59 = vector.load %arg4[%c7_59, %c0_60, %c0_61] : memref<9x8x16xf32, #tpu.memory_space<vmem>>, vector<1x8x16xf32>
    %60 = vector.shape_cast %59 : vector<1x8x16xf32> to vector<8x16xf32>
    %cst_62 = arith.constant dense<0.000000e+00> : vector<32x16xf32>
    %61 = tpu.matmul %58, %60, %cst_62 {dimension_numbers = #tpu.dot_dimension_numbers<[1], [0], [0], [1], [0, 0, 1, 1], [], []>} : vector<32x8xf32>, vector<8x16xf32>, vector<32x16xf32> -> vector<32x16xf32>
    %62 = arith.addf %55, %61 : vector<32x16xf32>
    %c8 = arith.constant 8 : index
    %c0_63 = arith.constant 0 : index
    %c0_64 = arith.constant 0 : index
    %63 = vector.load %arg3[%c8, %c0_63, %c0_64] : memref<9x32x128xf32, #tpu.memory_space<vmem>>, vector<1x32x128xf32>
    %64 = vector.shape_cast %63 : vector<1x32x128xf32> to vector<32x128xf32>
    %cst_65 = arith.constant dense<0.000000e+00> : vector<32x8xf32>
    %65 = tpu.matmul %64, %7, %cst_65 {dimension_numbers = #tpu.dot_dimension_numbers<[1], [0], [0], [1], [0, 0, 1, 1], [], []>} : vector<32x128xf32>, vector<128x8xf32>, vector<32x8xf32> -> vector<32x8xf32>
    %c8_66 = arith.constant 8 : index
    %c0_67 = arith.constant 0 : index
    %c0_68 = arith.constant 0 : index
    %66 = vector.load %arg4[%c8_66, %c0_67, %c0_68] : memref<9x8x16xf32, #tpu.memory_space<vmem>>, vector<1x8x16xf32>
    %67 = vector.shape_cast %66 : vector<1x8x16xf32> to vector<8x16xf32>
    %cst_69 = arith.constant dense<0.000000e+00> : vector<32x16xf32>
    %68 = tpu.matmul %65, %67, %cst_69 {dimension_numbers = #tpu.dot_dimension_numbers<[1], [0], [0], [1], [0, 0, 1, 1], [], []>} : vector<32x8xf32>, vector<8x16xf32>, vector<32x16xf32> -> vector<32x16xf32>
    %69 = arith.addf %62, %68 : vector<32x16xf32>
    %c0_70 = arith.constant 0 : index
    %c0_71 = arith.constant 0 : index
    %70 = vector.load %arg5[%c0_70, %c0_71] : memref<1x16xf32, #tpu.memory_space<vmem>>, vector<1x16xf32>
    %71 = vector.broadcast %70 : vector<1x16xf32> to vector<32x16xf32>
    %72 = arith.addf %69, %71 : vector<32x16xf32>
    %cst_72 = arith.constant 0.000000e+00 : f32
    %73 = vector.broadcast %cst_72 : f32 to vector<32x16xf32>
    %74 = arith.maximumf %72, %73 : vector<32x16xf32>
    %c0_73 = arith.constant 0 : index
    %c0_74 = arith.constant 0 : index
    %75 = vector.load %arg8[%c0_73, %c0_74] : memref<8x32xf32, #tpu.memory_space<vmem>>, vector<8x32xf32>
    %c0_75 = arith.constant 0 : index
    %c0_76 = arith.constant 0 : index
    %76 = vector.load %arg6[%c0_75, %c0_76] : memref<16x256xf32, #tpu.memory_space<vmem>>, vector<16x256xf32>
    %cst_77 = arith.constant dense<0.000000e+00> : vector<32x256xf32>
    %77 = tpu.matmul %74, %76, %cst_77 {dimension_numbers = #tpu.dot_dimension_numbers<[1], [0], [0], [1], [0, 0, 1, 1], [], []>} : vector<32x16xf32>, vector<16x256xf32>, vector<32x256xf32> -> vector<32x256xf32>
    %c0_78 = arith.constant 0 : index
    %c0_79 = arith.constant 0 : index
    %78 = vector.load %arg7[%c0_78, %c0_79] : memref<32x256xf32, #tpu.memory_space<vmem>>, vector<32x256xf32>
    %79 = arith.mulf %77, %78 : vector<32x256xf32>
    %cst_80 = arith.constant dense<0.000000e+00> : vector<8x256xf32>
    %80 = tpu.matmul %75, %79, %cst_80 {dimension_numbers = #tpu.dot_dimension_numbers<[1], [0], [0], [1], [0, 0, 1, 1], [], []>} : vector<8x32xf32>, vector<32x256xf32>, vector<8x256xf32> -> vector<8x256xf32>
    %c0_81 = arith.constant 0 : index
    %c0_82 = arith.constant 0 : index
    %81 = vector.load %arg10[%c0_81, %c0_82] : memref<256x64xf32, #tpu.memory_space<vmem>>, vector<256x64xf32>
    %cst_83 = arith.constant dense<0.000000e+00> : vector<8x64xf32>
    %82 = tpu.matmul %80, %81, %cst_83 {dimension_numbers = #tpu.dot_dimension_numbers<[1], [0], [0], [1], [0, 0, 1, 1], [], []>} : vector<8x256xf32>, vector<256x64xf32>, vector<8x64xf32> -> vector<8x64xf32>
    %c0_84 = arith.constant 0 : index
    %c0_85 = arith.constant 0 : index
    %83 = vector.load %arg9[%c0_84, %c0_85] : memref<8x8xf32, #tpu.memory_space<vmem>>, vector<8x8xf32>
    %c0_86 = arith.constant 0 : index
    %c0_87 = arith.constant 0 : index
    %84 = vector.load %arg11[%c0_86, %c0_87] : memref<8x64xf32, #tpu.memory_space<vmem>>, vector<8x64xf32>
    %cst_88 = arith.constant dense<0.000000e+00> : vector<8x64xf32>
    %85 = tpu.matmul %83, %84, %cst_88 {dimension_numbers = #tpu.dot_dimension_numbers<[1], [0], [0], [1], [0, 0, 1, 1], [], []>} : vector<8x8xf32>, vector<8x64xf32>, vector<8x64xf32> -> vector<8x64xf32>
    %86 = arith.addf %82, %85 : vector<8x64xf32>
    %c0_89 = arith.constant 0 : index
    %c0_90 = arith.constant 0 : index
    %87 = vector.load %arg12[%c0_89, %c0_90] : memref<1x64xf32, #tpu.memory_space<vmem>>, vector<1x64xf32>
    %88 = vector.broadcast %87 : vector<1x64xf32> to vector<8x64xf32>
    %89 = arith.addf %86, %88 : vector<8x64xf32>
    %cst_91 = arith.constant 0.000000e+00 : f32
    %90 = vector.broadcast %cst_91 : f32 to vector<8x64xf32>
    %91 = arith.maximumf %89, %90 : vector<8x64xf32>
    %c0_92 = arith.constant 0 : index
    %c0_93 = arith.constant 0 : index
    %92 = vector.load %arg13[%c0_92, %c0_93] : memref<64x32xf32, #tpu.memory_space<vmem>>, vector<64x32xf32>
    %cst_94 = arith.constant dense<0.000000e+00> : vector<8x32xf32>
    %93 = tpu.matmul %91, %92, %cst_94 {dimension_numbers = #tpu.dot_dimension_numbers<[1], [0], [0], [1], [0, 0, 1, 1], [], []>} : vector<8x64xf32>, vector<64x32xf32>, vector<8x32xf32> -> vector<8x32xf32>
    %c0_95 = arith.constant 0 : index
    %c0_96 = arith.constant 0 : index
    %94 = vector.load %arg14[%c0_95, %c0_96] : memref<1x32xf32, #tpu.memory_space<vmem>>, vector<1x32xf32>
    %95 = vector.broadcast %94 : vector<1x32xf32> to vector<8x32xf32>
    %96 = arith.addf %93, %95 : vector<8x32xf32>
    %cst_97 = arith.constant 0.000000e+00 : f32
    %97 = vector.broadcast %cst_97 : f32 to vector<8x32xf32>
    %98 = arith.maximumf %96, %97 : vector<8x32xf32>
    %c0_98 = arith.constant 0 : index
    %c0_99 = arith.constant 0 : index
    %99 = vector.load %arg15[%c0_98, %c0_99] : memref<32x128xf32, #tpu.memory_space<vmem>>, vector<32x128xf32>
    %cst_100 = arith.constant dense<0.000000e+00> : vector<8x128xf32>
    %100 = tpu.matmul %98, %99, %cst_100 {dimension_numbers = #tpu.dot_dimension_numbers<[1], [0], [0], [1], [0, 0, 1, 1], [], []>} : vector<8x32xf32>, vector<32x128xf32>, vector<8x128xf32> -> vector<8x128xf32>
    %c0_101 = arith.constant 0 : index
    %c0_102 = arith.constant 0 : index
    %101 = vector.load %arg16[%c0_101, %c0_102] : memref<1x128xf32, #tpu.memory_space<vmem>>, vector<1x128xf32>
    %102 = vector.broadcast %101 : vector<1x128xf32> to vector<8x128xf32>
    %103 = arith.addf %100, %102 : vector<8x128xf32>
    %c0_103 = arith.constant 0 : index
    %c0_104 = arith.constant 0 : index
    %104 = vector.load %arg17[%c0_103, %c0_104] : memref<8x128xf32, #tpu.memory_space<vmem>>, vector<8x128xf32>
    tpu.vector_store %arg17[%c0_103, %c0_104], %103 {strides = array<i32>} : memref<8x128xf32, #tpu.memory_space<vmem>>, vector<8x128xf32>,
    return
  }
}

</mosaic_0001>

<bundles_post_ra>
// kernel: critic_forward.1
= control target key start
LH: loop header
LB: loop body
LE: loop exit
PB: predicated region body
PF: predicated region fallthrough
CT: control target
= control target key end

     0   :  { %vm81_vm0 = vcmask 130048   ;;  %vm473_vm1 = vcmask 64512   ;;  %vm2156_vm2 = vcmask 261120   ;;  %vm3475_vm3 = vmmov 0   ;;  %s4386_s1 = inlined_call_operand.vmem [shape: f32[16,8], index: 1, kind: input, shape index: {}]   ;;  %s4387_s0 = inlined_call_operand.vmem [shape: f32[128,16], index: 0, kind: input, shape index: {}]   ;;  %s4388_s3 = inlined_call_operand.vmem [shape: f32[9,32,128], index: 3, kind: input, shape index: {}]   ;;  %s4389_s2 = inlined_call_operand.vmem [shape: f32[1,8], index: 2, kind: input, shape index: {}]   ;;  %s4390_s4 = inlined_call_operand.vmem [shape: f32[9,8,16], index: 4, kind: input, shape index: {}]   ;;  %s4391_s6 = inlined_call_operand.vmem [shape: f32[16,256], index: 6, kind: input, shape index: {}]   ;;  %s4392_s5 = inlined_call_operand.vmem [shape: f32[1,16], index: 5, kind: input, shape index: {}]   ;;  %s4393_s10 = inlined_call_operand.vmem [shape: f32[256,64], index: 10, kind: input, shape index: {}]   ;;  %s4394_s7 = inlined_call_operand.vmem [shape: f32[32,256], index: 7, kind: input, shape index: {}]   ;;  %s4395_s8 = inlined_call_operand.vmem [shape: f32[8,32], index: 8, kind: input, shape index: {}]   ;;  %s4396_s11 = inlined_call_operand.vmem [shape: f32[8,64], index: 11, kind: input, shape index: {}]   ;;  %s4397_s9 = inlined_call_operand.vmem [shape: f32[8,8], index: 9, kind: input, shape index: {}]   ;;  %s4398_s13 = inlined_call_operand.vmem [shape: f32[64,32], index: 13, kind: input, shape index: {}]   ;;  %s4399_s12 = inlined_call_operand.vmem [shape: f32[1,64], index: 12, kind: input, shape index: {}]   ;;  %s4400_s15 = inlined_call_operand.vmem [shape: f32[32,128], index: 15, kind: input, shape index: {}]   ;;  %s4401_s14 = inlined_call_operand.vmem [shape: f32[1,32], index: 14, kind: input, shape index: {}]   ;;  %s4402_s16 = inlined_call_operand.vmem [shape: f32[1,128], index: 16, kind: input, shape index: {}]   ;;  %s4403_s17 = inlined_call_operand.vmem [shape: f32[8,128], index: 17, kind: output, shape index: {}]  }
   0x1   :  { %4406 = sst [smem:[#allocation2_spill]] %s4386_s1  ;;  %v291_v18 = vld [vmem:[%s4388_s3] sm:$0xff]  ;;  %vm2432_vm4 = vcmask 523264  }
   0x2   :  { %4407 = sst [smem:[#allocation3_spill]] %s4387_s0  ;;  %v2613_v19 = vld [vmem:[%s4388_s3 + $0x20] sm:$0xff]  ;;  %3055 = vmatprep.mubr.f32.mxu1 %v291_v18 }
   0x3   :  { %s4408_s26 = sld [smem:[#allocation2_spill]]  ;;  %v3655_v34 = vld [vmem:[%s4389_s2] ss:$0 sm:$0xff] }
   0x4   :  { %s4409_s30 = sld [smem:[#allocation3_spill]] }
   0x9   :  { %v73_v0 = vld [vmem:[%s4408_s26 + $0x8] sm:$0xff]  ;;  %v72_v1 = vld [vmem:[%s4408_s26] sm:$0xff] }
   0xa   :  { %v56_v2 = vld [vmem:[%s4409_s30] sm:$0xff]  ;;  %2995 = vmatprep.subr.mxu0 %v73_v0  ;;  %v57_v3 = vld [vmem:[%s4409_s30 + $0x8] sm:$0xff]  ;;  %v58_v4 = vld [vmem:[%s4409_s30 + $0x10] sm:$0xff] }
   0xb   :  { %2999 = vmatprep.mubr.msk.f32.mxu0 %vm81_vm0, %v56_v2  ;;  %2996 = vmatpush3.msra.mxu0 %v73_v0  ;;  %v59_v5 = vld [vmem:[%s4409_s30 + $0x18] sm:$0xff]  ;;  %v60_v6 = vld [vmem:[%s4409_s30 + $0x20] sm:$0xff]  ;;  %v61_v7 = vld [vmem:[%s4409_s30 + $0x28] sm:$0xff] }
   0xc   :  { %2997 = vmatprep.subr.mxu0 %v72_v1  ;;  %v62_v8 = vld [vmem:[%s4409_s30 + $0x30] sm:$0xff]  ;;  %v63_v9 = vld [vmem:[%s4409_s30 + $0x38] sm:$0xff]  ;;  %v64_v10 = vld [vmem:[%s4409_s30 + $0x40] sm:$0xff] }
   0xd   :  { %2998 = vmatpush3.msra.mxu0 %v72_v1  ;;  %v65_v11 = vld [vmem:[%s4409_s30 + $0x48] sm:$0xff]  ;;  %v66_v12 = vld [vmem:[%s4409_s30 + $0x50] sm:$0xff]  ;;  %v67_v13 = vld [vmem:[%s4409_s30 + $0x58] sm:$0xff] }
   0xe   :  { %3000 = vmatmul.mubr.msk.f32.vlgmr.msra.gmra.mxu0 %vm81_vm0, %v57_v3  ;;  %v68_v14 = vld [vmem:[%s4409_s30 + $0x60] sm:$0xff]  ;;  %v69_v15 = vld [vmem:[%s4409_s30 + $0x68] sm:$0xff]  ;;  %v70_v16 = vld [vmem:[%s4409_s30 + $0x70] sm:$0xff] }
   0xf   :  { %3002 = vmatprep.mubr.msk.f32.mxu0 %vm81_vm0, %v58_v4  ;;  %v71_v17 = vld [vmem:[%s4409_s30 + $0x78] sm:$0xff] }
  0x12   :  { %3003 = vmatmul.mubr.msk.f32.gmra.mxu0 %vm81_vm0, %v59_v5  ;;  %v292_v5 = vld [vmem:[%s4388_s3 + $0x8] sm:$0xff] }
  0x13   :  { %3005 = vmatprep.mubr.msk.f32.mxu0 %vm81_vm0, %v60_v6  ;;  %v2614_v6 = vld [vmem:[%s4388_s3 + $0x28] sm:$0xff] }
  0x16   :  { %3006 = vmatmul.mubr.msk.f32.gmra.mxu0 %vm81_vm0, %v61_v7  ;;  %v2617_v7 = vld [vmem:[%s4390_s4 + $0x8] sm:$0xff] }
  0x17   :  { %3008 = vmatprep.mubr.msk.f32.mxu0 %vm81_vm0, %v62_v8  ;;  %v293_v8 = vld [vmem:[%s4388_s3 + $0x10] sm:$0xff] }
  0x1a   :  { %3009 = vmatmul.mubr.msk.f32.gmra.mxu0 %vm81_vm0, %v63_v9  ;;  %v2615_v9 = vld [vmem:[%s4388_s3 + $0x30] sm:$0xff] }
  0x1b   :  { %3011 = vmatprep.mubr.msk.f32.mxu0 %vm81_vm0, %v64_v10  ;;  %v294_v10 = vld [vmem:[%s4388_s3 + $0x18] sm:$0xff] }
  0x1e   :  { %3012 = vmatmul.mubr.msk.f32.gmra.mxu0 %vm81_vm0, %v65_v11  ;;  %v2616_v11 = vld [vmem:[%s4388_s3 + $0x38] sm:$0xff] }
  0x1f   :  { %3014 = vmatprep.mubr.msk.f32.mxu0 %vm81_vm0, %v66_v12  ;;  %v380_v12 = vld [vmem:[%s4390_s4] sm:$0xff] }
  0x22   :  { %3015 = vmatmul.mubr.msk.f32.gmra.mxu0 %vm81_vm0, %v67_v13  ;;  %v2630_v13 = vld [vmem:[%s4390_s4 + $0x10] sm:$0xff] }
  0x23   :  { %3017 = vmatprep.mubr.msk.f32.mxu0 %vm81_vm0, %v68_v14 }
  0x26   :  { %3018 = vmatmul.mubr.msk.f32.gmra.mxu0 %vm81_vm0, %v69_v15 }
  0x27   :  { %3020 = vmatprep.mubr.msk.f32.mxu0 %vm81_vm0, %v70_v16 }
  0x2a   :  { %3021 = vmatmul.mubr.msk.f32.gmra.mxu0 %vm81_vm0, %v71_v17 }
  0x2b   :  { %3093 = vmatprep.mubr.f32.mxu0 %v2613_v19 }
  0xce   :  { %v3642_v20 = vpop.f32.mrf.mxu0 }
  0xcf   :  { %v202_v63 = vadd.f32 %v3642_v20, %v3655_v34 }
  0xd0   :  { %v3644_v21 = vpop.f32.mrf.mxu0 }
  0xd1   :  { %v197_v1 = vadd.f32 %v3655_v34, %v3644_v21  ;;  %v3758_v3 = vmax.f32 %v202_v63, 0.0 }
  0xd2   :  { %v3646_v22 = vpop.f32.mrf.mxu0 }
  0xd3   :  { %v212_v59 = vadd.f32 %v3646_v22, %v3655_v34  ;;  %v3764_v4 = vmax.f32 %v197_v1, 0.0  ;;  %v2626_v22 = vld [vmem:[%s4388_s3 + $0x40] sm:$0xff] }
  0xd4   :  { %v3648_v23 = vpop.f32.mrf.mxu0 }
  0xd5   :  { %v207_v61 = vadd.f32 %v3655_v34, %v3648_v23  ;;  %v3744_v0 = vmax.f32 %v212_v59, 0.0  ;;  %v2627_v23 = vld [vmem:[%s4388_s3 + $0x48] sm:$0xff] }
  0xd6   :  { %v3007_v24 = vpop.f32.mrf.mxu0 }
  0xd7   :  { %v222_v55 = vadd.f32 %v3007_v24, %v3655_v34  ;;  %v3752_v2 = vmax.f32 %v207_v61, 0.0  ;;  %v2639_v24 = vld [vmem:[%s4390_s4 + $0x18] sm:$0xff] }
  0xd8   :  { %v3650_v25 = vpop.f32.mrf.mxu0 }
  0xd9   :  { %v217_v57 = vadd.f32 %v3655_v34, %v3650_v25  ;;  %v3728_v60 = vmax.f32 %v222_v55, 0.0  ;;  %v2628_v25 = vld [vmem:[%s4388_s3 + $0x50] sm:$0xff] }
  0xda   :  { %v3010_v26 = vpop.f32.mrf.mxu0 }
  0xdb   :  { %v232_v51 = vadd.f32 %v3010_v26, %v3655_v34  ;;  %v3736_v62 = vmax.f32 %v217_v57, 0.0  ;;  %v2629_v26 = vld [vmem:[%s4388_s3 + $0x58] sm:$0xff] }
  0xdc   :  { %v226_v27 = vpop.f32.mrf.mxu0 }
  0xdd   :  { %v227_v53 = vadd.f32 %v3655_v34, %v226_v27  ;;  %v3712_v56 = vmax.f32 %v232_v51, 0.0  ;;  %v2638_v51 = vld [vmem:[%s4388_s3 + $0x78] sm:$0xff] }
  0xde   :  { %v3013_v28 = vpop.f32.mrf.mxu0 }
  0xdf   :  { %v242_v47 = vadd.f32 %v3013_v28, %v3655_v34  ;;  %v3720_v58 = vmax.f32 %v227_v53, 0.0 }
  0xe0   :  { %v236_v29 = vpop.f32.mrf.mxu0 }
  0xe1   :  { %v237_v49 = vadd.f32 %v3655_v34, %v236_v29  ;;  %v3698_v52 = vmax.f32 %v242_v47, 0.0  ;;  %v2648_v47 = vld [vmem:[%s4390_s4 + $0x20] sm:$0xff] }
  0xe2   :  { %v3016_v30 = vpop.f32.mrf.mxu0 }
  0xe3   :  { %v252_v43 = vadd.f32 %v3016_v30, %v3655_v34  ;;  %v3705_v54 = vmax.f32 %v237_v49, 0.0  ;;  %v2637_v49 = vld [vmem:[%s4388_s3 + $0x70] sm:$0xff] }
  0xe4   :  { %v246_v31 = vpop.f32.mrf.mxu0 }
  0xe5   :  { %v247_v45 = vadd.f32 %v3655_v34, %v246_v31  ;;  %v3684_v48 = vmax.f32 %v252_v43, 0.0  ;;  %v2635_v43 = vld [vmem:[%s4388_s3 + $0x60] sm:$0xff] }
  0xe6   :  { %v3019_v32 = vpop.f32.mrf.mxu0 }
  0xe7   :  { %v262_v38 = vadd.f32 %v3019_v32, %v3655_v34  ;;  %v3691_v50 = vmax.f32 %v247_v45, 0.0  ;;  %v2636_v45 = vld [vmem:[%s4388_s3 + $0x68] sm:$0xff] }
  0xe8   :  { %v256_v33 = vpop.f32.mrf.mxu0 }
  0xe9   :  { %v257_v41 = vadd.f32 %v3655_v34, %v256_v33  ;;  %v3670_v44 = vmax.f32 %v262_v38, 0.0 }
  0xea   :  { %v3022_v35 = vpop.f32.mrf.mxu0 }
  0xeb   :  { %v272_v36 = vadd.f32 %v3022_v35, %v3655_v34  ;;  %v3677_v46 = vmax.f32 %v257_v41, 0.0 }
  0xec   :  { %v266_v37 = vpop.f32.mrf.mxu0 }
  0xed   :  { %v3659_v39 = vmax.f32 %v272_v36, 0.0  ;;  %v267_v40 = vadd.f32 %v3655_v34, %v266_v37 }
  0xef   :  { %v3663_v42 = vmax.f32 %v267_v40, 0.0  ;;  %3023 = vmatprep.subr.mxu1 %v3659_v39  ;;  %3061 = vmatprep.subr.mxu0 %v3659_v39 }
  0xf0   :  { %3024 = vmatpush3.msra.mxu1 %v3659_v39  ;;  %3062 = vmatpush3.msra.mxu0 %v3659_v39 }
  0xf1   :  { %3025 = vmatprep.subr.mxu1 %v3663_v42  ;;  %3063 = vmatprep.subr.mxu0 %v3663_v42 }
  0xf2   :  { %3026 = vmatpush3.msra.mxu1 %v3663_v42  ;;  %3064 = vmatpush3.msra.mxu0 %v3663_v42 }
  0xf3   :  { %3027 = vmatprep.subr.mxu1 %v3670_v44  ;;  %3065 = vmatprep.subr.mxu0 %v3670_v44 }
  0xf4   :  { %3028 = vmatpush3.msra.mxu1 %v3670_v44  ;;  %3066 = vmatpush3.msra.mxu0 %v3670_v44 }
  0xf5   :  { %3029 = vmatprep.subr.mxu1 %v3677_v46  ;;  %3067 = vmatprep.subr.mxu0 %v3677_v46 }
  0xf6   :  { %3030 = vmatpush3.msra.mxu1 %v3677_v46  ;;  %3068 = vmatpush3.msra.mxu0 %v3677_v46 }
  0xf7   :  { %3031 = vmatprep.subr.mxu1 %v3684_v48  ;;  %3069 = vmatprep.subr.mxu0 %v3684_v48 }
  0xf8   :  { %3032 = vmatpush3.msra.mxu1 %v3684_v48  ;;  %3070 = vmatpush3.msra.mxu0 %v3684_v48 }
  0xf9   :  { %3033 = vmatprep.subr.mxu1 %v3691_v50  ;;  %3071 = vmatprep.subr.mxu0 %v3691_v50 }
  0xfa   :  { %3034 = vmatpush3.msra.mxu1 %v3691_v50  ;;  %3072 = vmatpush3.msra.mxu0 %v3691_v50 }
  0xfb   :  { %3035 = vmatprep.subr.mxu1 %v3698_v52  ;;  %3073 = vmatprep.subr.mxu0 %v3698_v52 }
  0xfc   :  { %3036 = vmatpush3.msra.mxu1 %v3698_v52  ;;  %3074 = vmatpush3.msra.mxu0 %v3698_v52 }
  0xfd   :  { %3037 = vmatprep.subr.mxu1 %v3705_v54  ;;  %3075 = vmatprep.subr.mxu0 %v3705_v54 }
  0xfe   :  { %3038 = vmatpush3.msra.mxu1 %v3705_v54  ;;  %3076 = vmatpush3.msra.mxu0 %v3705_v54 }
  0xff   :  { %3039 = vmatprep.subr.mxu1 %v3712_v56  ;;  %3077 = vmatprep.subr.mxu0 %v3712_v56 }
 0x100   :  { %3040 = vmatpush3.msra.mxu1 %v3712_v56  ;;  %3078 = vmatpush3.msra.mxu0 %v3712_v56 }
 0x101   :  { %3041 = vmatprep.subr.mxu1 %v3720_v58  ;;  %3079 = vmatprep.subr.mxu0 %v3720_v58 }
 0x102   :  { %3042 = vmatpush3.msra.mxu1 %v3720_v58  ;;  %3080 = vmatpush3.msra.mxu0 %v3720_v58 }
 0x103   :  { %3043 = vmatprep.subr.mxu1 %v3728_v60  ;;  %3081 = vmatprep.subr.mxu0 %v3728_v60 }
 0x104   :  { %3044 = vmatpush3.msra.mxu1 %v3728_v60  ;;  %3082 = vmatpush3.msra.mxu0 %v3728_v60 }
 0x105   :  { %3045 = vmatprep.subr.mxu1 %v3736_v62  ;;  %3083 = vmatprep.subr.mxu0 %v3736_v62 }
 0x106   :  { %3046 = vmatpush3.msra.mxu1 %v3736_v62  ;;  %3084 = vmatpush3.msra.mxu0 %v3736_v62 }
 0x107   :  { %3047 = vmatprep.subr.mxu1 %v3744_v0  ;;  %3085 = vmatprep.subr.mxu0 %v3744_v0 }
 0x108   :  { %3048 = vmatpush3.msra.mxu1 %v3744_v0  ;;  %3086 = vmatpush3.msra.mxu0 %v3744_v0 }
 0x109   :  { %3049 = vmatprep.subr.mxu1 %v3752_v2  ;;  %3087 = vmatprep.subr.mxu0 %v3752_v2 }
 0x10a   :  { %3050 = vmatpush3.msra.mxu1 %v3752_v2  ;;  %3088 = vmatpush3.msra.mxu0 %v3752_v2 }
 0x10b   :  { %3051 = vmatprep.subr.mxu1 %v3758_v3  ;;  %3089 = vmatprep.subr.mxu0 %v3758_v3 }
 0x10c   :  { %3052 = vmatpush3.msra.mxu1 %v3758_v3  ;;  %3090 = vmatpush3.msra.mxu0 %v3758_v3 }
 0x10d   :  { %3053 = vmatprep.subr.mxu1 %v3764_v4  ;;  %3091 = vmatprep.subr.mxu0 %v3764_v4 }
 0x10e   :  { %3054 = vmatpush3.msra.mxu1 %v3764_v4  ;;  %3092 = vmatpush3.msra.mxu0 %v3764_v4 }
 0x10f   :  { %3056 = vmatmul.mubr.f32.vlgmr.msra.gmra.mxu1 %v292_v5  ;;  %3094 = vmatmul.mubr.f32.vlgmr.msra.gmra.mxu0 %v2614_v6 }
 0x110   :  { %3099 = vmatprep.subr.mxu1 %v2617_v7  ;;  %3058 = vmatprep.mubr.f32.mxu1 %v293_v8 }
 0x111   :  { %3100 = vmatpush3.msra.mxu1 %v2617_v7  ;;  %3096 = vmatprep.mubr.f32.mxu0 %v2615_v9 }
 0x112   :  { %3115 = vmatprep.subr.mxu1 %v3659_v39  ;;  %3107 = vmatprep.subr.mxu0 %v380_v12 }
 0x113   :  { %3059 = vmatmul.mubr.f32.gmra.mxu1 %v294_v10  ;;  %3097 = vmatmul.mubr.f32.gmra.mxu0 %v2616_v11 }
 0x114   :  { %3108 = vmatpush3.msra.mxu0 %v380_v12  ;;  %v2644_v12 = vld [vmem:[%s4388_s3 + $0x80] sm:$0xff] }
 0x115   :  { %3153 = vmatprep.subr.mxu0 %v2630_v13 }
 0x1cf   :  { %v3057_v14 = vpop.f32.mrf.mxu1  ;;  %v3095_v15 = vpop.f32.mrf.mxu0 }
 0x1d1   :  { %v361_v16 = vpop.f32.mrf.mxu1  ;;  %v452_v17 = vpop.f32.mrf.mxu0 }
 0x1d2   :  { %3101 = vmatprep.mubr.msk.f32.mxu1 %vm473_vm1, %v452_v17  ;;  %3109 = vmatprep.mubr.msk.f32.mxu0 %vm473_vm1, %v361_v16  ;;  %v2647_v16 = vld [vmem:[%s4388_s3 + $0x98] sm:$0xff] }
 0x1d3   :  { %3102 = vmatmul.mubr.msk.f32.vlgmr.msra.gmra.mxu1 %vm473_vm1, %v3095_v15  ;;  %3110 = vmatmul.mubr.msk.f32.vlgmr.msra.gmra.mxu0 %vm473_vm1, %v3057_v14  ;;  %v3060_v18 = vpop.f32.mrf.mxu1  ;;  %v3098_v19 = vpop.f32.mrf.mxu0  ;;  %v2657_v14 = vld [vmem:[%s4390_s4 + $0x28] sm:$0xff]  ;;  %v2646_v15 = vld [vmem:[%s4388_s3 + $0x90] sm:$0xff] }
 0x1d4   :  { %3116 = vmatpush3.msra.mxu1 %v3659_v39  ;;  %3154 = vmatpush3.msra.mxu0 %v2630_v13  ;;  %v2645_v13 = vld [vmem:[%s4388_s3 + $0x88] sm:$0xff] }
 0x1d5   :  { %3117 = vmatprep.subr.mxu1 %v3663_v42  ;;  %3161 = vmatprep.subr.mxu0 %v3659_v39  ;;  %v371_v20 = vpop.f32.mrf.mxu1  ;;  %v462_v21 = vpop.f32.mrf.mxu0 }
 0x1d6   :  { %3118 = vmatpush3.msra.mxu1 %v3663_v42  ;;  %3104 = vmatprep.mubr.msk.f32.mxu1 %vm473_vm1, %v462_v21 }
 0x1d7   :  { %3119 = vmatprep.subr.mxu1 %v3670_v44  ;;  %3112 = vmatprep.mubr.msk.f32.mxu0 %vm473_vm1, %v371_v20 }
 0x1d8   :  { %3120 = vmatpush3.msra.mxu1 %v3670_v44  ;;  %3113 = vmatmul.mubr.msk.f32.gmra.mxu0 %vm473_vm1, %v3060_v18 }
 0x1d9   :  { %3121 = vmatprep.subr.mxu1 %v3677_v46  ;;  %3105 = vmatmul.mubr.msk.f32.gmra.mxu1 %vm473_vm1, %v3098_v19 }
 0x1da   :  { %3122 = vmatpush3.msra.mxu1 %v3677_v46  ;;  %3147 = vmatprep.mubr.f32.mxu1 %v2626_v22 }
 0x1db   :  { %3123 = vmatprep.subr.mxu1 %v3684_v48 }
 0x1dc   :  { %3124 = vmatpush3.msra.mxu1 %v3684_v48 }
 0x1dd   :  { %3125 = vmatprep.subr.mxu1 %v3691_v50 }
 0x1de   :  { %3126 = vmatpush3.msra.mxu1 %v3691_v50 }
 0x1df   :  { %3127 = vmatprep.subr.mxu1 %v3698_v52 }
 0x1e0   :  { %3128 = vmatpush3.msra.mxu1 %v3698_v52 }
 0x1e1   :  { %3129 = vmatprep.subr.mxu1 %v3705_v54 }
 0x1e2   :  { %3130 = vmatpush3.msra.mxu1 %v3705_v54 }
 0x1e3   :  { %3131 = vmatprep.subr.mxu1 %v3712_v56 }
 0x1e4   :  { %3132 = vmatpush3.msra.mxu1 %v3712_v56 }
 0x1e5   :  { %3133 = vmatprep.subr.mxu1 %v3720_v58 }
 0x1e6   :  { %3134 = vmatpush3.msra.mxu1 %v3720_v58 }
 0x1e7   :  { %3135 = vmatprep.subr.mxu1 %v3728_v60 }
 0x1e8   :  { %3136 = vmatpush3.msra.mxu1 %v3728_v60 }
 0x1e9   :  { %3137 = vmatprep.subr.mxu1 %v3736_v62 }
 0x1ea   :  { %3138 = vmatpush3.msra.mxu1 %v3736_v62 }
 0x1eb   :  { %3139 = vmatprep.subr.mxu1 %v3744_v0 }
 0x1ec   :  { %3140 = vmatpush3.msra.mxu1 %v3744_v0 }
 0x1ed   :  { %3141 = vmatprep.subr.mxu1 %v3752_v2 }
 0x1ee   :  { %3142 = vmatpush3.msra.mxu1 %v3752_v2 }
 0x1ef   :  { %3143 = vmatprep.subr.mxu1 %v3758_v3 }
 0x1f0   :  { %3144 = vmatpush3.msra.mxu1 %v3758_v3 }
 0x1f1   :  { %3145 = vmatprep.subr.mxu1 %v3764_v4 }
 0x1f2   :  { %3146 = vmatpush3.msra.mxu1 %v3764_v4 }
 0x1f3   :  { %3148 = vmatmul.mubr.f32.vlgmr.msra.gmra.mxu1 %v2627_v23  ;;  %3199 = vmatprep.subr.mxu1 %v2639_v24 }
 0x1f4   :  { %3200 = vmatpush3.msra.mxu1 %v2639_v24  ;;  %3150 = vmatprep.mubr.f32.mxu1 %v2628_v25 }
 0x1f5   :  { %3207 = vmatprep.subr.mxu1 %v3659_v39 }
 0x1f7   :  { %3151 = vmatmul.mubr.f32.gmra.mxu1 %v2629_v26 }
 0x293   :  { %v3103_v27 = vpop.f32.mrf.mxu1  ;;  %v3111_v28 = vpop.f32.mrf.mxu0 }
 0x294   :  { %v655_v29 = vadd.f32 %v3111_v28, %v3103_v27 }
 0x295   :  { %v552_v30 = vpop.f32.mrf.mxu1  ;;  %v649_v31 = vpop.f32.mrf.mxu0 }
 0x296   :  { %v650_v32 = vadd.f32 %v649_v31, %v552_v30  ;;  %v2654_v30 = vld [vmem:[%s4388_s3 + $0xa8] sm:$0xff]  ;;  %v2666_v31 = vld [vmem:[%s4390_s4 + $0x30] sm:$0xff] }
 0x298   :  { %v3114_v34 = vpop.f32.mrf.mxu0 }
 0x299   :  { %v3106_v33 = vpop.f32.mrf.mxu1 }
 0x29a   :  { %v665_v35 = vadd.f32 %v3114_v34, %v3106_v33  ;;  %v659_v53 = vpop.f32.mrf.mxu0  ;;  %v2656_v33 = vld [vmem:[%s4388_s3 + $0xb8] sm:$0xff] }
 0x29b   :  { %v562_v36 = vpop.f32.mrf.mxu1 }
 0x29c   :  { %v660_v1 = vadd.f32 %v659_v53, %v562_v36  ;;  %v2662_v53 = vld [vmem:[%s4388_s3 + $0xc0] sm:$0xff] }
 0x2b3   :  { %v3149_v37 = vpop.f32.mrf.mxu1 }
 0x2b5   :  { %v739_v38 = vpop.f32.mrf.mxu1 }
 0x2b6   :  { %3155 = vmatprep.mubr.msk.f32.mxu0 %vm473_vm1, %v739_v38 }
 0x2b7   :  { %v3152_v40 = vpop.f32.mrf.mxu1  ;;  %3156 = vmatmul.mubr.msk.f32.vlgmr.msra.gmra.mxu0 %vm473_vm1, %v3149_v37 }
 0x2b8   :  { %3162 = vmatpush3.msra.mxu0 %v3659_v39 }
 0x2b9   :  { %3163 = vmatprep.subr.mxu0 %v3663_v42  ;;  %v749_v41 = vpop.f32.mrf.mxu1 }
 0x2ba   :  { %3164 = vmatpush3.msra.mxu0 %v3663_v42  ;;  %3158 = vmatprep.mubr.msk.f32.mxu0 %vm473_vm1, %v749_v41 }
 0x2bb   :  { %3165 = vmatprep.subr.mxu0 %v3670_v44  ;;  %3159 = vmatmul.mubr.msk.f32.gmra.mxu0 %vm473_vm1, %v3152_v40 }
 0x2bc   :  { %3166 = vmatpush3.msra.mxu0 %v3670_v44  ;;  %3193 = vmatprep.mubr.f32.mxu0 %v2635_v43 }
 0x2bd   :  { %3167 = vmatprep.subr.mxu0 %v3677_v46 }
 0x2be   :  { %3168 = vmatpush3.msra.mxu0 %v3677_v46 }
 0x2bf   :  { %3169 = vmatprep.subr.mxu0 %v3684_v48 }
 0x2c0   :  { %3170 = vmatpush3.msra.mxu0 %v3684_v48 }
 0x2c1   :  { %3171 = vmatprep.subr.mxu0 %v3691_v50 }
 0x2c2   :  { %3172 = vmatpush3.msra.mxu0 %v3691_v50 }
 0x2c3   :  { %3173 = vmatprep.subr.mxu0 %v3698_v52 }
 0x2c4   :  { %3174 = vmatpush3.msra.mxu0 %v3698_v52 }
 0x2c5   :  { %3175 = vmatprep.subr.mxu0 %v3705_v54 }
 0x2c6   :  { %3176 = vmatpush3.msra.mxu0 %v3705_v54 }
 0x2c7   :  { %3177 = vmatprep.subr.mxu0 %v3712_v56 }
 0x2c8   :  { %3178 = vmatpush3.msra.mxu0 %v3712_v56 }
 0x2c9   :  { %3179 = vmatprep.subr.mxu0 %v3720_v58 }
 0x2ca   :  { %3180 = vmatpush3.msra.mxu0 %v3720_v58 }
 0x2cb   :  { %3181 = vmatprep.subr.mxu0 %v3728_v60 }
 0x2cc   :  { %3182 = vmatpush3.msra.mxu0 %v3728_v60 }
 0x2cd   :  { %3183 = vmatprep.subr.mxu0 %v3736_v62 }
 0x2ce   :  { %3184 = vmatpush3.msra.mxu0 %v3736_v62 }
 0x2cf   :  { %3185 = vmatprep.subr.mxu0 %v3744_v0 }
 0x2d0   :  { %3186 = vmatpush3.msra.mxu0 %v3744_v0 }
 0x2d1   :  { %3187 = vmatprep.subr.mxu0 %v3752_v2 }
 0x2d2   :  { %3188 = vmatpush3.msra.mxu0 %v3752_v2 }
 0x2d3   :  { %3189 = vmatprep.subr.mxu0 %v3758_v3 }
 0x2d4   :  { %3190 = vmatpush3.msra.mxu0 %v3758_v3 }
 0x2d5   :  { %3191 = vmatprep.subr.mxu0 %v3764_v4 }
 0x2d6   :  { %3192 = vmatpush3.msra.mxu0 %v3764_v4 }
 0x2d7   :  { %3194 = vmatmul.mubr.f32.vlgmr.msra.gmra.mxu0 %v2636_v45  ;;  %3245 = vmatprep.subr.mxu0 %v2648_v47 }
 0x2d8   :  { %3246 = vmatpush3.msra.mxu0 %v2648_v47  ;;  %3196 = vmatprep.mubr.f32.mxu0 %v2637_v49 }
 0x2d9   :  { %3253 = vmatprep.subr.mxu0 %v3659_v39 }
 0x2db   :  { %3197 = vmatmul.mubr.f32.gmra.mxu0 %v2638_v51 }
 0x377   :  { %v3157_v55 = vpop.f32.mrf.mxu0 }
 0x378   :  { %v858_v57 = vadd.f32 %v3157_v55, %v655_v29  ;;  %v2653_v29 = vld [vmem:[%s4388_s3 + $0xa0] sm:$0xff]  ;;  %v2663_v55 = vld [vmem:[%s4388_s3 + $0xc8] sm:$0xff] }
 0x379   :  { %v838_v59 = vpop.f32.mrf.mxu0 }
 0x37a   :  { %v857_v61 = vadd.f32 %v838_v59, %v650_v32  ;;  %v2655_v32 = vld [vmem:[%s4388_s3 + $0xb0] sm:$0xff] }
 0x37b   :  { %v3160_v63 = vpop.f32.mrf.mxu0  ;;  %v2664_v59 = vld [vmem:[%s4388_s3 + $0xd0] sm:$0xff] }
 0x37c   :  { %v860_v5 = vadd.f32 %v3160_v63, %v665_v35 }
 0x37d   :  { %v848_v6 = vpop.f32.mrf.mxu0 }
 0x37e   :  { %v859_v7 = vadd.f32 %v848_v6, %v660_v1 }
 0x397   :  { %v3195_v8 = vpop.f32.mrf.mxu0 }
 0x399   :  { %v932_v9 = vpop.f32.mrf.mxu0 }
 0x39a   :  { %3201 = vmatprep.mubr.msk.f32.mxu1 %vm473_vm1, %v932_v9 }
 0x39b   :  { %v3198_v10 = vpop.f32.mrf.mxu0  ;;  %3202 = vmatmul.mubr.msk.f32.vlgmr.msra.gmra.mxu1 %vm473_vm1, %v3195_v8 }
 0x39c   :  { %3208 = vmatpush3.msra.mxu1 %v3659_v39 }
 0x39d   :  { %3209 = vmatprep.subr.mxu1 %v3663_v42  ;;  %v942_v11 = vpop.f32.mrf.mxu0 }
 0x39e   :  { %3210 = vmatpush3.msra.mxu1 %v3663_v42  ;;  %3204 = vmatprep.mubr.msk.f32.mxu1 %vm473_vm1, %v942_v11 }
 0x39f   :  { %3211 = vmatprep.subr.mxu1 %v3670_v44  ;;  %3205 = vmatmul.mubr.msk.f32.gmra.mxu1 %vm473_vm1, %v3198_v10 }
 0x3a0   :  { %3212 = vmatpush3.msra.mxu1 %v3670_v44  ;;  %3239 = vmatprep.mubr.f32.mxu1 %v2644_v12 }
 0x3a1   :  { %3213 = vmatprep.subr.mxu1 %v3677_v46 }
 0x3a2   :  { %3214 = vmatpush3.msra.mxu1 %v3677_v46 }
 0x3a3   :  { %3215 = vmatprep.subr.mxu1 %v3684_v48 }
 0x3a4   :  { %3216 = vmatpush3.msra.mxu1 %v3684_v48 }
 0x3a5   :  { %3217 = vmatprep.subr.mxu1 %v3691_v50 }
 0x3a6   :  { %3218 = vmatpush3.msra.mxu1 %v3691_v50 }
 0x3a7   :  { %3219 = vmatprep.subr.mxu1 %v3698_v52 }
 0x3a8   :  { %3220 = vmatpush3.msra.mxu1 %v3698_v52 }
 0x3a9   :  { %3221 = vmatprep.subr.mxu1 %v3705_v54 }
 0x3aa   :  { %3222 = vmatpush3.msra.mxu1 %v3705_v54 }
 0x3ab   :  { %3223 = vmatprep.subr.mxu1 %v3712_v56 }
 0x3ac   :  { %3224 = vmatpush3.msra.mxu1 %v3712_v56 }
 0x3ad   :  { %3225 = vmatprep.subr.mxu1 %v3720_v58 }
 0x3ae   :  { %3226 = vmatpush3.msra.mxu1 %v3720_v58 }
 0x3af   :  { %3227 = vmatprep.subr.mxu1 %v3728_v60 }
 0x3b0   :  { %3228 = vmatpush3.msra.mxu1 %v3728_v60 }
 0x3b1   :  { %3229 = vmatprep.subr.mxu1 %v3736_v62 }
 0x3b2   :  { %3230 = vmatpush3.msra.mxu1 %v3736_v62 }
 0x3b3   :  { %3231 = vmatprep.subr.mxu1 %v3744_v0 }
 0x3b4   :  { %3232 = vmatpush3.msra.mxu1 %v3744_v0 }
 0x3b5   :  { %3233 = vmatprep.subr.mxu1 %v3752_v2 }
 0x3b6   :  { %3234 = vmatpush3.msra.mxu1 %v3752_v2 }
 0x3b7   :  { %3235 = vmatprep.subr.mxu1 %v3758_v3 }
 0x3b8   :  { %3236 = vmatpush3.msra.mxu1 %v3758_v3 }
 0x3b9   :  { %3237 = vmatprep.subr.mxu1 %v3764_v4 }
 0x3ba   :  { %3238 = vmatpush3.msra.mxu1 %v3764_v4 }
 0x3bb   :  { %3240 = vmatmul.mubr.f32.vlgmr.msra.gmra.mxu1 %v2645_v13  ;;  %3291 = vmatprep.subr.mxu1 %v2657_v14 }
 0x3bc   :  { %3292 = vmatpush3.msra.mxu1 %v2657_v14  ;;  %3242 = vmatprep.mubr.f32.mxu1 %v2646_v15  ;;  %v2671_v15 = vld [vmem:[%s4388_s3 + $0xe0] sm:$0xff] }
 0x3bd   :  { %3299 = vmatprep.subr.mxu1 %v3659_v39 }
 0x3bf   :  { %3243 = vmatmul.mubr.f32.gmra.mxu1 %v2647_v16  ;;  %v2672_v16 = vld [vmem:[%s4388_s3 + $0xe8] sm:$0xff] }
 0x45b   :  { %v3203_v17 = vpop.f32.mrf.mxu1 }
 0x45c   :  { %v1051_v18 = vadd.f32 %v3203_v17, %v858_v57  ;;  %v2675_v57 = vld [vmem:[%s4390_s4 + $0x38] sm:$0xff]  ;;  %v2673_v17 = vld [vmem:[%s4388_s3 + $0xf0] sm:$0xff] }
 0x45d   :  { %v1031_v19 = vpop.f32.mrf.mxu1 }
 0x45e   :  { %v1050_v20 = vadd.f32 %v1031_v19, %v857_v61  ;;  %v2665_v61 = vld [vmem:[%s4388_s3 + $0xd8] sm:$0xff] }
 0x45f   :  { %v3206_v21 = vpop.f32.mrf.mxu1 }
 0x460   :  { %v1053_v22 = vadd.f32 %v3206_v21, %v860_v5 }
 0x461   :  { %v1041_v23 = vpop.f32.mrf.mxu1 }
 0x462   :  { %v1052_v24 = vadd.f32 %v1041_v23, %v859_v7 }
 0x47b   :  { %v3241_v25 = vpop.f32.mrf.mxu1 }
 0x47d   :  { %v1125_v26 = vpop.f32.mrf.mxu1 }
 0x47e   :  { %3247 = vmatprep.mubr.msk.f32.mxu0 %vm473_vm1, %v1125_v26 }
 0x47f   :  { %v3244_v27 = vpop.f32.mrf.mxu1  ;;  %3248 = vmatmul.mubr.msk.f32.vlgmr.msra.gmra.mxu0 %vm473_vm1, %v3241_v25 }
 0x480   :  { %3254 = vmatpush3.msra.mxu0 %v3659_v39 }
 0x481   :  { %3255 = vmatprep.subr.mxu0 %v3663_v42  ;;  %v1135_v28 = vpop.f32.mrf.mxu1 }
 0x482   :  { %3256 = vmatpush3.msra.mxu0 %v3663_v42  ;;  %3250 = vmatprep.mubr.msk.f32.mxu0 %vm473_vm1, %v1135_v28 }
 0x483   :  { %3257 = vmatprep.subr.mxu0 %v3670_v44  ;;  %3251 = vmatmul.mubr.msk.f32.gmra.mxu0 %vm473_vm1, %v3244_v27 }
 0x484   :  { %3258 = vmatpush3.msra.mxu0 %v3670_v44  ;;  %3285 = vmatprep.mubr.f32.mxu0 %v2653_v29 }
 0x485   :  { %3259 = vmatprep.subr.mxu0 %v3677_v46 }
 0x486   :  { %3260 = vmatpush3.msra.mxu0 %v3677_v46 }
 0x487   :  { %3261 = vmatprep.subr.mxu0 %v3684_v48 }
 0x488   :  { %3262 = vmatpush3.msra.mxu0 %v3684_v48 }
 0x489   :  { %3263 = vmatprep.subr.mxu0 %v3691_v50 }
 0x48a   :  { %3264 = vmatpush3.msra.mxu0 %v3691_v50 }
 0x48b   :  { %3265 = vmatprep.subr.mxu0 %v3698_v52 }
 0x48c   :  { %3266 = vmatpush3.msra.mxu0 %v3698_v52 }
 0x48d   :  { %3267 = vmatprep.subr.mxu0 %v3705_v54 }
 0x48e   :  { %3268 = vmatpush3.msra.mxu0 %v3705_v54 }
 0x48f   :  { %3269 = vmatprep.subr.mxu0 %v3712_v56 }
 0x490   :  { %3270 = vmatpush3.msra.mxu0 %v3712_v56 }
 0x491   :  { %3271 = vmatprep.subr.mxu0 %v3720_v58 }
 0x492   :  { %3272 = vmatpush3.msra.mxu0 %v3720_v58 }
 0x493   :  { %3273 = vmatprep.subr.mxu0 %v3728_v60 }
 0x494   :  { %3274 = vmatpush3.msra.mxu0 %v3728_v60 }
 0x495   :  { %3275 = vmatprep.subr.mxu0 %v3736_v62 }
 0x496   :  { %3276 = vmatpush3.msra.mxu0 %v3736_v62 }
 0x497   :  { %3277 = vmatprep.subr.mxu0 %v3744_v0 }
 0x498   :  { %3278 = vmatpush3.msra.mxu0 %v3744_v0 }
 0x499   :  { %3279 = vmatprep.subr.mxu0 %v3752_v2 }
 0x49a   :  { %3280 = vmatpush3.msra.mxu0 %v3752_v2 }
 0x49b   :  { %3281 = vmatprep.subr.mxu0 %v3758_v3 }
 0x49c   :  { %3282 = vmatpush3.msra.mxu0 %v3758_v3 }
 0x49d   :  { %3283 = vmatprep.subr.mxu0 %v3764_v4 }
 0x49e   :  { %3284 = vmatpush3.msra.mxu0 %v3764_v4 }
 0x49f   :  { %3286 = vmatmul.mubr.f32.vlgmr.msra.gmra.mxu0 %v2654_v30  ;;  %3337 = vmatprep.subr.mxu0 %v2666_v31 }
 0x4a0   :  { %3338 = vmatpush3.msra.mxu0 %v2666_v31  ;;  %3288 = vmatprep.mubr.f32.mxu0 %v2655_v32  ;;  %v2680_v31 = vld [vmem:[%s4388_s3 + $0x100] sm:$0xff]  ;;  %v2038_v32 = vld [vmem:[%s4391_s6 + $0x18] sm:$0xff] }
 0x4a1   :  { %3345 = vmatprep.subr.mxu0 %v3659_v39 }
 0x4a3   :  { %3289 = vmatmul.mubr.f32.gmra.mxu0 %v2656_v33  ;;  %v2037_v33 = vld [vmem:[%s4391_s6 + $0x10] sm:$0xff] }
 0x53f   :  { %v3249_v34 = vpop.f32.mrf.mxu0 }
 0x540   :  { %v1244_v35 = vadd.f32 %v3249_v34, %v1051_v18  ;;  %v2674_v18 = vld [vmem:[%s4388_s3 + $0xf8] sm:$0xff]  ;;  %v2036_v34 = vld [vmem:[%s4391_s6 + $0x8] sm:$0xff] }
 0x541   :  { %v1224_v36 = vpop.f32.mrf.mxu0 }
 0x542   :  { %v1243_v37 = vadd.f32 %v1224_v36, %v1050_v20  ;;  %v3474_v36 = vmov 0.0  }
 0x543   :  { %v3252_v38 = vpop.f32.mrf.mxu0 }
 0x544   :  { %v1246_v40 = vadd.f32 %v3252_v38, %v1053_v22 }
 0x545   :  { %v1234_v41 = vpop.f32.mrf.mxu0 }
 0x546   :  { %v1245_v43 = vadd.f32 %v1234_v41, %v1052_v24 }
 0x55f   :  { %v3287_v45 = vpop.f32.mrf.mxu0 }
 0x561   :  { %v1318_v47 = vpop.f32.mrf.mxu0 }
 0x562   :  { %3293 = vmatprep.mubr.msk.f32.mxu1 %vm473_vm1, %v1318_v47 }
 0x563   :  { %v3290_v49 = vpop.f32.mrf.mxu0  ;;  %3294 = vmatmul.mubr.msk.f32.vlgmr.msra.gmra.mxu1 %vm473_vm1, %v3287_v45 }
 0x564   :  { %3300 = vmatpush3.msra.mxu1 %v3659_v39 }
 0x565   :  { %3301 = vmatprep.subr.mxu1 %v3663_v42  ;;  %v1328_v51 = vpop.f32.mrf.mxu0 }
 0x566   :  { %3302 = vmatpush3.msra.mxu1 %v3663_v42  ;;  %3296 = vmatprep.mubr.msk.f32.mxu1 %vm473_vm1, %v1328_v51 }
 0x567   :  { %3303 = vmatprep.subr.mxu1 %v3670_v44  ;;  %3297 = vmatmul.mubr.msk.f32.gmra.mxu1 %vm473_vm1, %v3290_v49 }
 0x568   :  { %3304 = vmatpush3.msra.mxu1 %v3670_v44  ;;  %3331 = vmatprep.mubr.f32.mxu1 %v2662_v53 }
 0x569   :  { %3305 = vmatprep.subr.mxu1 %v3677_v46 }
 0x56a   :  { %3306 = vmatpush3.msra.mxu1 %v3677_v46 }
 0x56b   :  { %3307 = vmatprep.subr.mxu1 %v3684_v48 }
 0x56c   :  { %3308 = vmatpush3.msra.mxu1 %v3684_v48 }
 0x56d   :  { %3309 = vmatprep.subr.mxu1 %v3691_v50 }
 0x56e   :  { %3310 = vmatpush3.msra.mxu1 %v3691_v50 }
 0x56f   :  { %3311 = vmatprep.subr.mxu1 %v3698_v52 }
 0x570   :  { %3312 = vmatpush3.msra.mxu1 %v3698_v52 }
 0x571   :  { %3313 = vmatprep.subr.mxu1 %v3705_v54 }
 0x572   :  { %3314 = vmatpush3.msra.mxu1 %v3705_v54 }
 0x573   :  { %3315 = vmatprep.subr.mxu1 %v3712_v56 }
 0x574   :  { %3316 = vmatpush3.msra.mxu1 %v3712_v56 }
 0x575   :  { %3317 = vmatprep.subr.mxu1 %v3720_v58 }
 0x576   :  { %3318 = vmatpush3.msra.mxu1 %v3720_v58 }
 0x577   :  { %3319 = vmatprep.subr.mxu1 %v3728_v60 }
 0x578   :  { %3320 = vmatpush3.msra.mxu1 %v3728_v60 }
 0x579   :  { %3321 = vmatprep.subr.mxu1 %v3736_v62 }
 0x57a   :  { %3322 = vmatpush3.msra.mxu1 %v3736_v62 }
 0x57b   :  { %3323 = vmatprep.subr.mxu1 %v3744_v0 }
 0x57c   :  { %3324 = vmatpush3.msra.mxu1 %v3744_v0 }
 0x57d   :  { %3325 = vmatprep.subr.mxu1 %v3752_v2 }
 0x57e   :  { %3326 = vmatpush3.msra.mxu1 %v3752_v2 }
 0x57f   :  { %3327 = vmatprep.subr.mxu1 %v3758_v3 }
 0x580   :  { %3328 = vmatpush3.msra.mxu1 %v3758_v3 }
 0x581   :  { %3329 = vmatprep.subr.mxu1 %v3764_v4 }
 0x582   :  { %3330 = vmatpush3.msra.mxu1 %v3764_v4 }
 0x583   :  { %3332 = vmatmul.mubr.f32.vlgmr.msra.gmra.mxu1 %v2663_v55  ;;  %3383 = vmatprep.subr.mxu1 %v2675_v57 }
 0x584   :  { %3384 = vmatpush3.msra.mxu1 %v2675_v57  ;;  %3334 = vmatprep.mubr.f32.mxu1 %v2664_v59 }
 0x585   :  { %3391 = vmatprep.subr.mxu1 %v3659_v39 }
 0x587   :  { %3335 = vmatmul.mubr.f32.gmra.mxu1 %v2665_v61 }
 0x623   :  { %v3295_v63 = vpop.f32.mrf.mxu1 }
 0x624   :  { %v1437_v1 = vadd.f32 %v3295_v63, %v1244_v35  ;;  %v2035_v35 = vld [vmem:[%s4391_s6] sm:$0xff] }
 0x625   :  { %v1417_v5 = vpop.f32.mrf.mxu1 }
 0x626   :  { %v1436_v6 = vadd.f32 %v1417_v5, %v1243_v37 }
 0x627   :  { %v3298_v7 = vpop.f32.mrf.mxu1 }
 0x628   :  { %v1439_v8 = vadd.f32 %v3298_v7, %v1246_v40  ;;  %v2246_v7 = vld [vmem:[%s4393_s10 + $0x78] sm:$0xff] }
 0x629   :  { %v1427_v9 = vpop.f32.mrf.mxu1 }
 0x62a   :  { %v1438_v10 = vadd.f32 %v1427_v9, %v1245_v43  ;;  %v2689_v43 = vld [vmem:[%s4392_s5] ss:$0 sm:$0xff]  ;;  %v2245_v9 = vld [vmem:[%s4393_s10 + $0x70] sm:$0xff] }
 0x643   :  { %v3333_v11 = vpop.f32.mrf.mxu1 }
 0x645   :  { %v1511_v12 = vpop.f32.mrf.mxu1 }
 0x646   :  { %3339 = vmatprep.mubr.msk.f32.mxu0 %vm473_vm1, %v1511_v12  ;;  %v2259_v12 = vld [vmem:[%s4393_s10 + $0xe0] sm:$0xff] }
 0x647   :  { %v3336_v13 = vpop.f32.mrf.mxu1  ;;  %3340 = vmatmul.mubr.msk.f32.vlgmr.msra.gmra.mxu0 %vm473_vm1, %v3333_v11  ;;  %v2244_v11 = vld [vmem:[%s4393_s10 + $0x68] sm:$0xff] }
 0x648   :  { %3346 = vmatpush3.msra.mxu0 %v3659_v39 }
 0x649   :  { %3347 = vmatprep.subr.mxu0 %v3663_v42  ;;  %v1521_v14 = vpop.f32.mrf.mxu1 }
 0x64a   :  { %3348 = vmatpush3.msra.mxu0 %v3663_v42  ;;  %3342 = vmatprep.mubr.msk.f32.mxu0 %vm473_vm1, %v1521_v14  ;;  %v2258_v14 = vld [vmem:[%s4393_s10 + $0xd8] sm:$0xff] }
 0x64b   :  { %3349 = vmatprep.subr.mxu0 %v3670_v44  ;;  %3343 = vmatmul.mubr.msk.f32.gmra.mxu0 %vm473_vm1, %v3336_v13  ;;  %v2243_v13 = vld [vmem:[%s4393_s10 + $0x60] sm:$0xff] }
 0x64c   :  { %3350 = vmatpush3.msra.mxu0 %v3670_v44  ;;  %3377 = vmatprep.mubr.f32.mxu0 %v2671_v15  ;;  %v2242_v15 = vld [vmem:[%s4393_s10 + $0x58] sm:$0xff] }
 0x64d   :  { %3351 = vmatprep.subr.mxu0 %v3677_v46 }
 0x64e   :  { %3352 = vmatpush3.msra.mxu0 %v3677_v46 }
 0x64f   :  { %3353 = vmatprep.subr.mxu0 %v3684_v48 }
 0x650   :  { %3354 = vmatpush3.msra.mxu0 %v3684_v48 }
 0x651   :  { %3355 = vmatprep.subr.mxu0 %v3691_v50 }
 0x652   :  { %3356 = vmatpush3.msra.mxu0 %v3691_v50 }
 0x653   :  { %3357 = vmatprep.subr.mxu0 %v3698_v52 }
 0x654   :  { %3358 = vmatpush3.msra.mxu0 %v3698_v52 }
 0x655   :  { %3359 = vmatprep.subr.mxu0 %v3705_v54 }
 0x656   :  { %3360 = vmatpush3.msra.mxu0 %v3705_v54 }
 0x657   :  { %3361 = vmatprep.subr.mxu0 %v3712_v56 }
 0x658   :  { %3362 = vmatpush3.msra.mxu0 %v3712_v56 }
 0x659   :  { %3363 = vmatprep.subr.mxu0 %v3720_v58 }
 0x65a   :  { %3364 = vmatpush3.msra.mxu0 %v3720_v58 }
 0x65b   :  { %3365 = vmatprep.subr.mxu0 %v3728_v60 }
 0x65c   :  { %3366 = vmatpush3.msra.mxu0 %v3728_v60 }
 0x65d   :  { %3367 = vmatprep.subr.mxu0 %v3736_v62 }
 0x65e   :  { %3368 = vmatpush3.msra.mxu0 %v3736_v62 }
 0x65f   :  { %3369 = vmatprep.subr.mxu0 %v3744_v0 }
 0x660   :  { %3370 = vmatpush3.msra.mxu0 %v3744_v0 }
 0x661   :  { %3371 = vmatprep.subr.mxu0 %v3752_v2 }
 0x662   :  { %3372 = vmatpush3.msra.mxu0 %v3752_v2 }
 0x663   :  { %3373 = vmatprep.subr.mxu0 %v3758_v3 }
 0x664   :  { %3374 = vmatpush3.msra.mxu0 %v3758_v3 }
 0x665   :  { %3375 = vmatprep.subr.mxu0 %v3764_v4 }
 0x666   :  { %3376 = vmatpush3.msra.mxu0 %v3764_v4 }
 0x667   :  { %3378 = vmatmul.mubr.f32.vlgmr.msra.gmra.mxu0 %v2672_v16  ;;  %v2257_v16 = vld [vmem:[%s4393_s10 + $0xd0] sm:$0xff] }
 0x668   :  { %3380 = vmatprep.mubr.f32.mxu0 %v2673_v17  ;;  %v2241_v17 = vld [vmem:[%s4393_s10 + $0x50] sm:$0xff] }
 0x66b   :  { %3381 = vmatmul.mubr.f32.gmra.mxu0 %v2674_v18  ;;  %v2256_v18 = vld [vmem:[%s4393_s10 + $0xc8] sm:$0xff] }
 0x707   :  { %v3341_v19 = vpop.f32.mrf.mxu0 }
 0x708   :  { %v1630_v20 = vadd.f32 %v3341_v19, %v1437_v1  ;;  %v2240_v19 = vld [vmem:[%s4393_s10 + $0x48] sm:$0xff] }
 0x709   :  { %v1610_v21 = vpop.f32.mrf.mxu0 }
 0x70a   :  { %v1629_v22 = vadd.f32 %v1610_v21, %v1436_v6  ;;  %v2262_v6 = vld [vmem:[%s4393_s10 + $0xf8] sm:$0xff]  ;;  %v2239_v21 = vld [vmem:[%s4393_s10 + $0x40] sm:$0xff] }
 0x70b   :  { %v3344_v23 = vpop.f32.mrf.mxu0 }
 0x70c   :  { %v1632_v24 = vadd.f32 %v3344_v23, %v1439_v8  ;;  %v2261_v8 = vld [vmem:[%s4393_s10 + $0xf0] sm:$0xff]  ;;  %v2238_v23 = vld [vmem:[%s4393_s10 + $0x38] sm:$0xff] }
 0x70d   :  { %v1620_v25 = vpop.f32.mrf.mxu0 }
 0x70e   :  { %v1631_v26 = vadd.f32 %v1620_v25, %v1438_v10  ;;  %v2260_v10 = vld [vmem:[%s4393_s10 + $0xe8] sm:$0xff]  ;;  %v2237_v25 = vld [vmem:[%s4393_s10 + $0x30] sm:$0xff] }
 0x727   :  { %v3379_v27 = vpop.f32.mrf.mxu0 }
 0x729   :  { %v1704_v28 = vpop.f32.mrf.mxu0 }
 0x72a   :  { %3385 = vmatprep.mubr.msk.f32.mxu1 %vm473_vm1, %v1704_v28  ;;  %v2251_v28 = vld [vmem:[%s4393_s10 + $0xa0] sm:$0xff] }
 0x72b   :  { %v3382_v29 = vpop.f32.mrf.mxu0  ;;  %3386 = vmatmul.mubr.msk.f32.vlgmr.msra.gmra.mxu1 %vm473_vm1, %v3379_v27  ;;  %v2236_v27 = vld [vmem:[%s4393_s10 + $0x28] sm:$0xff] }
 0x72c   :  { %3392 = vmatpush3.msra.mxu1 %v3659_v39  ;;  %v2681_v39 = vld [vmem:[%s4388_s3 + $0x108] sm:$0xff] }
 0x72d   :  { %3393 = vmatprep.subr.mxu1 %v3663_v42  ;;  %v1714_v30 = vpop.f32.mrf.mxu0 }
 0x72e   :  { %3394 = vmatpush3.msra.mxu1 %v3663_v42  ;;  %3388 = vmatprep.mubr.msk.f32.mxu1 %vm473_vm1, %v1714_v30  ;;  %v2682_v42 = vld [vmem:[%s4388_s3 + $0x110] sm:$0xff]  ;;  %v2250_v30 = vld [vmem:[%s4393_s10 + $0x98] sm:$0xff] }
 0x72f   :  { %3395 = vmatprep.subr.mxu1 %v3670_v44  ;;  %3389 = vmatmul.mubr.msk.f32.gmra.mxu1 %vm473_vm1, %v3382_v29  ;;  %v2235_v29 = vld [vmem:[%s4393_s10 + $0x20] sm:$0xff] }
 0x730   :  { %3396 = vmatpush3.msra.mxu1 %v3670_v44  ;;  %3423 = vmatprep.mubr.f32.mxu1 %v2680_v31  ;;  %v2683_v44 = vld [vmem:[%s4388_s3 + $0x118] sm:$0xff] }
 0x731   :  { %3397 = vmatprep.subr.mxu1 %v3677_v46  ;;  %v2234_v31 = vld [vmem:[%s4393_s10 + $0x18] sm:$0xff] }
 0x732   :  { %3398 = vmatpush3.msra.mxu1 %v3677_v46  ;;  %v2684_v46 = vld [vmem:[%s4390_s4 + $0x40] sm:$0xff] }
 0x733   :  { %3399 = vmatprep.subr.mxu1 %v3684_v48  ;;  %3429 = vmatprep.subr.mxu0 %v2684_v46 }
 0x734   :  { %3400 = vmatpush3.msra.mxu1 %v3684_v48  ;;  %3430 = vmatpush3.msra.mxu0 %v2684_v46 }
 0x735   :  { %3401 = vmatprep.subr.mxu1 %v3691_v50  ;;  %2079 = vmatprep.subr.mxu0 %v2038_v32 }
 0x736   :  { %3402 = vmatpush3.msra.mxu1 %v3691_v50 }
 0x737   :  { %3403 = vmatprep.subr.mxu1 %v3698_v52 }
 0x738   :  { %3404 = vmatpush3.msra.mxu1 %v3698_v52 }
 0x739   :  { %3405 = vmatprep.subr.mxu1 %v3705_v54 }
 0x73a   :  { %3406 = vmatpush3.msra.mxu1 %v3705_v54 }
 0x73b   :  { %3407 = vmatprep.subr.mxu1 %v3712_v56 }
 0x73c   :  { %3408 = vmatpush3.msra.mxu1 %v3712_v56 }
 0x73d   :  { %3409 = vmatprep.subr.mxu1 %v3720_v58 }
 0x73e   :  { %3410 = vmatpush3.msra.mxu1 %v3720_v58 }
 0x73f   :  { %3411 = vmatprep.subr.mxu1 %v3728_v60 }
 0x740   :  { %3412 = vmatpush3.msra.mxu1 %v3728_v60 }
 0x741   :  { %3413 = vmatprep.subr.mxu1 %v3736_v62 }
 0x742   :  { %3414 = vmatpush3.msra.mxu1 %v3736_v62 }
 0x743   :  { %3415 = vmatprep.subr.mxu1 %v3744_v0 }
 0x744   :  { %3416 = vmatpush3.msra.mxu1 %v3744_v0 }
 0x745   :  { %3417 = vmatprep.subr.mxu1 %v3752_v2 }
 0x746   :  { %3418 = vmatpush3.msra.mxu1 %v3752_v2 }
 0x747   :  { %3419 = vmatprep.subr.mxu1 %v3758_v3 }
 0x748   :  { %3420 = vmatpush3.msra.mxu1 %v3758_v3 }
 0x749   :  { %3421 = vmatprep.subr.mxu1 %v3764_v4 }
 0x74a   :  { %3422 = vmatpush3.msra.mxu1 %v3764_v4 }
 0x74b   :  { %3424 = vmatmul.mubr.f32.vlgmr.msra.gmra.mxu1 %v2681_v39  ;;  %2946 = vmatprep.subr.mxu1 %v2262_v6  ;;  %v2249_v39 = vld [vmem:[%s4393_s10 + $0x90] sm:$0xff]  ;;  %v2422_v6 = vld [vmem:[%s4398_s13 + $0x28] sm:$0xff] }
 0x74c   :  { %3426 = vmatprep.mubr.f32.mxu1 %v2682_v42  ;;  %2947 = vmatpush3.msra.mxu1 %v2246_v7  ;;  %v2233_v42 = vld [vmem:[%s4393_s10 + $0x10] sm:$0xff]  ;;  %v2421_v7 = vld [vmem:[%s4398_s13 + $0x20] sm:$0xff] }
 0x74d   :  { %2948 = vmatprep.subr.mxu1 %v2261_v8 }
 0x74e   :  { %2949 = vmatpush3.msra.mxu1 %v2245_v9  ;;  %v2420_v9 = vld [vmem:[%s4398_s13 + $0x18] sm:$0xff] }
 0x74f   :  { %3427 = vmatmul.mubr.f32.gmra.mxu1 %v2683_v44  ;;  %2950 = vmatprep.subr.mxu1 %v2260_v10 }
 0x750   :  { %2951 = vmatpush3.msra.mxu1 %v2244_v11  ;;  %v2419_v11 = vld [vmem:[%s4398_s13 + $0x10] sm:$0xff] }
 0x751   :  { %2952 = vmatprep.subr.mxu1 %v2259_v12  ;;  %v2418_v12 = vld [vmem:[%s4398_s13 + $0x8] sm:$0xff] }
 0x752   :  { %2953 = vmatpush3.msra.mxu1 %v2243_v13  ;;  %v2417_v13 = vld [vmem:[%s4398_s13] sm:$0xff] }
 0x753   :  { %2954 = vmatprep.subr.mxu1 %v2258_v14 }
 0x754   :  { %2955 = vmatpush3.msra.mxu1 %v2242_v15 }
 0x755   :  { %2956 = vmatprep.subr.mxu1 %v2257_v16 }
 0x756   :  { %2957 = vmatpush3.msra.mxu1 %v2241_v17  ;;  %v2696_v17 = vld [vmem:[%s4399_s12] ss:$0 sm:$0xff] }
 0x757   :  { %2958 = vmatprep.subr.mxu1 %v2256_v18 }
 0x758   :  { %2959 = vmatpush3.msra.mxu1 %v2240_v19 }
 0x7eb   :  { %v3387_v48 = vpop.f32.mrf.mxu1 }
 0x7ec   :  { %v1823_v50 = vadd.f32 %v3387_v48, %v1630_v20  ;;  %v2255_v20 = vld [vmem:[%s4393_s10 + $0xc0] sm:$0xff] }
 0x7ed   :  { %v1803_v52 = vpop.f32.mrf.mxu1  ;;  %2960 = vmatprep.subr.mxu1 %v2255_v20 }
 0x7ee   :  { %v1822_v54 = vadd.f32 %v1803_v52, %v1629_v22  ;;  %v2254_v22 = vld [vmem:[%s4393_s10 + $0xb8] sm:$0xff]  ;;  %2961 = vmatpush3.msra.mxu1 %v2239_v21 }
 0x7ef   :  { %v3390_v56 = vpop.f32.mrf.mxu1  ;;  %2962 = vmatprep.subr.mxu1 %v2254_v22  ;;  %v2510_v21 = vld [vmem:[%s4400_s15 + $0x18] sm:$0xff]  ;;  %v2509_v22 = vld [vmem:[%s4400_s15 + $0x10] sm:$0xff] }
 0x7f0   :  { %v1825_v58 = vadd.f32 %v3390_v56, %v1632_v24  ;;  %v2253_v24 = vld [vmem:[%s4393_s10 + $0xb0] sm:$0xff]  ;;  %2963 = vmatpush3.msra.mxu1 %v2238_v23  ;;  %v2508_v23 = vld [vmem:[%s4400_s15 + $0x8] sm:$0xff] }
 0x7f1   :  { %v1813_v60 = vpop.f32.mrf.mxu1  ;;  %2964 = vmatprep.subr.mxu1 %v2253_v24  ;;  %v2507_v24 = vld [vmem:[%s4400_s15] sm:$0xff] }
 0x7f2   :  { %v1824_v62 = vadd.f32 %v1813_v60, %v1631_v26  ;;  %v2252_v26 = vld [vmem:[%s4393_s10 + $0xa8] sm:$0xff]  ;;  %2965 = vmatpush3.msra.mxu1 %v2237_v25  ;;  %v2146_v60 = vld [vmem:[%s4394_s7 + $0x30] sm:$0xff]  ;;  %v2697_v25 = vld [vmem:[%s4401_s14] ss:$0 sm:$0xff] }
 0x7f3   :  { %2966 = vmatprep.subr.mxu1 %v2252_v26 }
 0x7f4   :  { %2967 = vmatpush3.msra.mxu1 %v2236_v27 }
 0x7f5   :  { %2968 = vmatprep.subr.mxu1 %v2251_v28 }
 0x7f6   :  { %2969 = vmatpush3.msra.mxu1 %v2235_v29 }
 0x7f7   :  { %2970 = vmatprep.subr.mxu1 %v2250_v30  ;;  %v2699_v30 = vld [vmem:[%s4402_s16] ss:$0 sm:$0xff] }
 0x7f8   :  { %2971 = vmatpush3.msra.mxu1 %v2234_v31 }
 0x7f9   :  { %2972 = vmatprep.subr.mxu1 %v2249_v39 }
 0x7fa   :  { %2973 = vmatpush3.msra.mxu1 %v2233_v42 }
 0x80b   :  { %v3425_v0 = vpop.f32.mrf.mxu1 }
 0x80d   :  { %v1897_v2 = vpop.f32.mrf.mxu1 }
 0x80e   :  { %3431 = vmatprep.mubr.msk.f32.mxu0 %vm473_vm1, %v1897_v2  ;;  %v2144_v2 = vld [vmem:[%s4394_s7 + $0x20] sm:$0xff] }
 0x80f   :  { %v3428_v3 = vpop.f32.mrf.mxu1  ;;  %3432 = vmatmul.mubr.msk.f32.vlgmr.msra.gmra.mxu0 %vm473_vm1, %v3425_v0 }
 0x810   :  { %2080 = vmatpush1.msra.mxu0 %v2037_v33  ;;  %v2142_v33 = vld [vmem:[%s4394_s7 + $0x10] sm:$0xff] }
 0x811   :  { %v1907_v4 = vpop.f32.mrf.mxu1  ;;  %2081 = vmatprep.subr.mxu0 %v2036_v34 }
 0x812   :  { %3434 = vmatprep.mubr.msk.f32.mxu0 %vm473_vm1, %v1907_v4  ;;  %2082 = vmatpush1.msra.mxu0 %v2035_v35  ;;  %v2143_v4 = vld [vmem:[%s4394_s7 + $0x18] sm:$0xff]  ;;  %v2141_v35 = vld [vmem:[%s4394_s7 + $0x8] sm:$0xff] }
 0x813   :  { %3435 = vmatmul.mubr.msk.f32.gmra.mxu0 %vm473_vm1, %v3428_v3 }
 0x814   :  { %2115 = vmatprep.mubr.f32.mxu0 %v3474_v36 }
 0x8cf   :  { %v3433_v37 = vpop.f32.mrf.mxu0 }
 0x8d0   :  { %v2016_v40 = vadd.f32 %v3433_v37, %v1823_v50 }
 0x8d1   :  { %v1996_v38 = vpop.f32.mrf.mxu0 }
 0x8d2   :  { %v2015_v41 = vadd.f32 %v1996_v38, %v1822_v54  ;;  %v2027_v51 = vadd.f32 %v2689_v43, %v2016_v40  ;;  %v2140_v38 = vld [vmem:[%s4394_s7] sm:$0xff] }
 0x8d3   :  { %v3436_v45 = vpop.f32.mrf.mxu0 }
 0x8d4   :  { %v2026_v47 = vadd.f32 %v2689_v43, %v2015_v41  ;;  %v2031_v57 = vmax.f32 %v2027_v51, 0.0  ;;  %v2018_v59 = vadd.f32 %v3436_v45, %v1825_v58  ;;  %v2147_v58 = vld [vmem:[%s4394_s7 + $0x38] sm:$0xff]  ;;  %v2232_v51 = vld [vmem:[%s4393_s10 + $0x8] sm:$0xff] }
 0x8d5   :  { %v2006_v49 = vpop.f32.mrf.mxu0 }
 0x8d6   :  { %v2030_v53 = vmax.f32 %v2026_v47, 0.0  ;;  %v2017_v55 = vadd.f32 %v2006_v49, %v1824_v62  ;;  %v2029_v63 = vadd.f32 %v2689_v43, %v2018_v59  ;;  %v2145_v62 = vld [vmem:[%s4394_s7 + $0x28] sm:$0xff]  ;;  %v2034_v47 = vld [vmem:[%s4395_s8] sm:$0xff] }
 0x8d7   :  { %v2248_v49 = vld [vmem:[%s4393_s10 + $0x88] sm:$0xff]  ;;  %v2263_v59 = vld [vmem:[%s4397_s9] sm:$0xff] }
 0x8d8   :  { %2690 = vmatmul.mubr.msk.f32.vlgmr.msra.gmra.mxu0 %vm81_vm0, %v2030_v53  ;;  %v2028_v61 = vadd.f32 %v2689_v43, %v2017_v55  ;;  %v2033_v5 = vmax.f32 %v2029_v63, 0.0  ;;  %2974 = vmatprep.subr.mxu1 %v2248_v49  ;;  %v2247_v53 = vld [vmem:[%s4393_s10 + $0x80] sm:$0xff]  ;;  %v2423_v63 = vld [vmem:[%s4398_s13 + $0x30] sm:$0xff] }
 0x8d9   :  { %2121 = vmatprep.mubr.f32.mxu0 %v3474_v36  ;;  %2975 = vmatpush3.msra.mxu1 %v2232_v51  ;;  %v2231_v55 = vld [vmem:[%s4393_s10] sm:$0xff] }
 0x8da   :  { %v2032_v1 = vmax.f32 %v2028_v61, 0.0  ;;  %2976 = vmatprep.subr.mxu1 %v2247_v53  ;;  %v2424_v61 = vld [vmem:[%s4398_s13 + $0x38] sm:$0xff] }
 0x8db   :  { %2977 = vmatpush3.msra.mxu1 %v2231_v55 }
 0x8dc   :  { %2691 = vmatmul.mubr.msk.f32.gmra.mxu0 %vm81_vm0, %v2031_v57  ;;  %v2264_v57 = vld [vmem:[%s4396_s11] sm:$0xff] }
 0x8dd   :  { %2127 = vmatprep.mubr.f32.mxu0 %v3474_v36 }
 0x8e0   :  { %2692 = vmatmul.mubr.msk.f32.gmra.mxu0 %vm81_vm0, %v2032_v1 }
 0x8e1   :  { %2133 = vmatprep.mubr.f32.mxu0 %v3474_v36 }
 0x8e4   :  { %2693 = vmatmul.mubr.msk.f32.gmra.mxu0 %vm81_vm0, %v2033_v5 }
 0x8e5   :  { %2224 = vmatprep.mubr.f32.mxu0 %v3474_v36 }
 0x998   :  { %v2117_v44 = vpop.f32.mrf.mxu0 }
 0x999   :  { %v2148_v45 = vmul.f32 %v2140_v38, %v2117_v44 }
 0x99a   :  { %v2119_v46 = vpop.f32.mrf.mxu0 }
 0x99b   :  { %v2149_v43 = vmul.f32 %v2141_v35, %v2119_v46 }
 0x99c   :  { %v2123_v48 = vpop.f32.mrf.mxu0 }
 0x99d   :  { %v2150_v41 = vmul.f32 %v2142_v33, %v2123_v48 }
 0x99e   :  { %v2125_v50 = vpop.f32.mrf.mxu0 }
 0x99f   :  { %v2151_v40 = vmul.f32 %v2143_v4, %v2125_v50 }
 0x9a0   :  { %v2129_v52 = vpop.f32.mrf.mxu0 }
 0x9a1   :  { %v2152_v37 = vmul.f32 %v2144_v2, %v2129_v52 }
 0x9a2   :  { %v2131_v54 = vpop.f32.mrf.mxu0 }
 0x9a3   :  { %v2153_v34 = vmul.f32 %v2145_v62, %v2131_v54 }
 0x9a4   :  { %v2135_v56 = vpop.f32.mrf.mxu0 }
 0x9a5   :  { %v2154_v32 = vmul.f32 %v2146_v60, %v2135_v56 }
 0x9a6   :  { %v2137_v0 = vpop.f32.mrf.mxu0 }
 0x9a7   :  { %v2155_v3 = vmul.f32 %v2147_v58, %v2137_v0 }
 0x9a9   :  { %2184 = vmatprep.subr.mxu0 %v2155_v3 }
 0x9aa   :  { %2185 = vmatpush1.msra.mxu0 %v2154_v32 }
 0x9ab   :  { %2186 = vmatprep.subr.mxu0 %v2153_v34 }
 0x9ac   :  { %2187 = vmatpush1.msra.mxu0 %v2152_v37 }
 0x9ad   :  { %2188 = vmatprep.subr.mxu0 %v2151_v40 }
 0x9ae   :  { %2189 = vmatpush1.msra.mxu0 %v2150_v41 }
 0x9af   :  { %2190 = vmatprep.subr.mxu0 %v2149_v43 }
 0x9b0   :  { %2191 = vmatpush1.msra.mxu0 %v2148_v45 }
 0x9b1   :  { %2694 = vmatmul.mubr.msk.f32.vlgmr.msra.gmra.mxu0 %vm2156_vm2, %v2034_v47  ;;  %3437 = vmatprep.subr.mxu0 %v3474_v36 }
 0x9b2   :  { %3438 = vmatpush3.msra.mxu0 %v2264_v57  ;;  %3439 = vmatprep.mubr.msk.f32.mxu0 %vm3475_vm3, %v3474_v36 }
 0x9b3   :  { %3442 = vmatprep.subr.mxu0 %v3474_v36 }
 0x9b5   :  { %3440 = vmatmul.mubr.msk.f32.vlgmr.msra.gmra.mxu0 %vm473_vm1, %v2263_v59 }
 0x9b6   :  { %3443 = vmatpush3.msra.mxu0 %v2424_v61  ;;  %3458 = vmatprep.mubr.msk.f32.mxu0 %vm3475_vm3, %v3474_v36 }
 0x9b7   :  { %3444 = vmatprep.subr.mxu0 %v3474_v36 }
 0x9b8   :  { %3445 = vmatpush3.msra.mxu0 %v2423_v63 }
 0x9b9   :  { %3446 = vmatprep.subr.mxu0 %v3474_v36 }
 0x9ba   :  { %3447 = vmatpush3.msra.mxu0 %v2422_v6 }
 0x9bb   :  { %3448 = vmatprep.subr.mxu0 %v3474_v36 }
 0x9bc   :  { %3449 = vmatpush3.msra.mxu0 %v2421_v7 }
 0x9bd   :  { %3450 = vmatprep.subr.mxu0 %v3474_v36 }
 0x9be   :  { %3451 = vmatpush3.msra.mxu0 %v2420_v9 }
 0x9bf   :  { %3452 = vmatprep.subr.mxu0 %v3474_v36 }
 0x9c0   :  { %3453 = vmatpush3.msra.mxu0 %v2419_v11 }
 0x9c1   :  { %3454 = vmatprep.subr.mxu0 %v3474_v36 }
 0x9c2   :  { %3455 = vmatpush3.msra.mxu0 %v2418_v12 }
 0x9c3   :  { %3456 = vmatprep.subr.mxu0 %v3474_v36 }
 0x9c4   :  { %3457 = vmatpush3.msra.mxu0 %v2417_v13 }
 0x9c5   :  { %3461 = vmatprep.subr.mxu0 %v3474_v36 }
 0xa71   :  { %v2226_v1 = vpop.f32.mrf.mxu0 }
 0xa73   :  { %v2228_v5 = vpop.f32.mrf.mxu0 }
 0xa74   :  { %2402 = vmatprep.mubr.f32.mxu1 %v2228_v5 }
 0xa75   :  { %2403 = vmatmul.mubr.f32.vlgmr.msra.gmra.mxu1 %v2226_v1  ;;  %v2334_v8 = vpop.f32.mrf.mxu0 }
 0xa77   :  { %v3441_v10 = vpop.f32.mrf.mxu0 }
 0xb35   :  { %v2978_v14 = vpop.f32.mrf.mxu1 }
 0xb37   :  { %v2979_v15 = vpop.f32.mrf.mxu1 }
 0xb38   :  { %v2980_v16 = vadd.f32 %v2979_v15, %v2978_v14 }
 0xb3a   :  { %v2405_v18 = vadd.f32 %v2980_v16, %v2334_v8 }
 0xb3c   :  { %v2415_v19 = vadd.f32 %v2696_v17, %v2405_v18 }
 0xb3e   :  { %v2416_v20 = vmax.f32 %v2415_v19, 0.0 }
 0xb40   :  { %3459 = vmatmul.mubr.msk.f32.vlgmr.msra.gmra.mxu0 %vm2432_vm4, %v2416_v20 }
 0xb41   :  { %3462 = vmatpush3.msra.mxu0 %v2510_v21  ;;  %3469 = vmatprep.mubr.msk.f32.mxu0 %vm3475_vm3, %v3474_v36 }
 0xb42   :  { %3463 = vmatprep.subr.mxu0 %v3474_v36 }
 0xb43   :  { %3464 = vmatpush3.msra.mxu0 %v2509_v22 }
 0xb44   :  { %3465 = vmatprep.subr.mxu0 %v3474_v36 }
 0xb45   :  { %3466 = vmatpush3.msra.mxu0 %v2508_v23 }
 0xb46   :  { %3467 = vmatprep.subr.mxu0 %v3474_v36 }
 0xb47   :  { %3468 = vmatpush3.msra.mxu0 %v2507_v24 }
 0xc00   :  { %v2502_v26 = vpop.f32.mrf.mxu0 }
 0xc01   :  { %v2503_v27 = vadd.f32 %v2697_v25, %v2502_v26 }
 0xc02   :  { %v3460_v28 = vpop.f32.mrf.mxu0 }
 0xc03   :  { %v2506_v29 = vmax.f32 %v2503_v27, 0.0 }
 0xc05   :  { %3470 = vmatmul.mubr.msk.f32.vlgmr.msra.gmra.mxu0 %vm2156_vm2, %v2506_v29 }
 0xcc5   :  { %v2587_v36 = vpop.f32.mrf.mxu0 }
 0xcc6   :  { %v2588_v31 = vadd.f32 %v2699_v30, %v2587_v36 }
 0xcc7   :  { %v3471_v39 = vpop.f32.mrf.mxu0 }
 0xcc8   :  { %2591 = vst [vmem:[%s4403_s17] sm:$0xff] %v2588_v31 }

</bundles_post_ra>
